<compile_context>
chip_gen: v6e
topology: v6e:2x2x1
jax: 0.10.0
libtpu: 0.0.40
codegen_flags: <defaults>
</compile_context>

<pallas_src>
import functools

import jax
import jax.numpy as jnp
from jax.experimental import pallas as pl
from jax.experimental.pallas import tpu as pltpu


# MXU input dtype for the conv / downsample matmuls (f32 accumulate everywhere).
# Set to jnp.float32 for bit-tighter agreement with the f32 reference.
MXU_DTYPE = jnp.bfloat16


# ----------------------------------------------------------------------------
# Kernel: one full TCN stream (all TemporalBlocks) -> per-stream partial logits.
# Grid axis (size 2, "parallel") selects the stream (video / audio); on v7x the
# two streams shard across the 2 TensorCores, on v5e/v6e it is a 2-step loop.
# ----------------------------------------------------------------------------
def _tcn_stream_kernel(*refs, layer_cfg, B, T, K, mxu_dtype):
    # refs = (x_ref, *conv_param_refs, fc_w_ref, out_ref)
    x_ref, fc_ref, out_ref = refs[0], refs[-2], refs[-1]
    params = refs[1:-2]

    BT = B * T
    x = x_ref[0]                                         # (B*T, C0), channels on lanes

    # Row-time index (i % T): built ONCE, reused by every causal mask (review #2).
    row_t = jax.lax.broadcasted_iota(jnp.int32, (BT, 1), 0) % T

    def causal_conv(x_in, w_ref, b_ref, dil, relu):
        """Causal dilated Conv1d: one matmul against [W_0|...|W_{K-1}], then a
        pltpu.roll (XLU) + mask (VPU) per non-zero tap shift, accumulated in f32."""
        w_all = w_ref[0]                                 # (C_in, K*C_out), bf16/f32
        bias = b_ref[0]                                  # (1, C_out), f32
        c_out = bias.shape[-1]
        z = jnp.dot(x_in.astype(mxu_dtype), w_all,
                    preferred_element_type=jnp.float32)  # (BT, K*C_out), single MXU pass
        pad = (K - 1) * dil
        acc = None
        for k in range(K):                               # static unroll, K=3
            s = pad - k * dil                            # causal shift (timesteps) of tap k
            zk = z[:, k * c_out:(k + 1) * c_out]         # 128-aligned lane slice (free)
            if s != 0:
                zk = pltpu.roll(zk, shift=s, axis=0)     # sublane rotate on the XLU
                zk = jnp.where(row_t >= s, zk, 0.0)      # zero rows fed by the causal pad
            acc = zk if acc is None else acc + zk
        y = acc + bias
        return jnp.maximum(y, 0.0) if relu else y

    i = 0
    for dil, has_ds in layer_cfg:                        # static unrolled layer stack
        w1, b1, w2, b2 = params[i], params[i + 1], params[i + 2], params[i + 3]
        i += 4
        out = causal_conv(x, w1, b1, dil, True)
        out = causal_conv(out, w2, b2, dil, True)
        if has_ds:                                       # 1x1 conv residual projection
            wd, bd = params[i], params[i + 1]
            i += 2
            res = jnp.dot(x.astype(mxu_dtype), wd[0],
                          preferred_element_type=jnp.float32) + bd[0]
        else:
            res = x
        x = jnp.maximum(out + res, 0.0)                  # fused residual add + relu

    # Last-timestep features via static row slices (review #4): rows b*T + T-1.
    feat = jnp.concatenate(
        [x[b * T + T - 1: b * T + T, :] for b in range(B)], axis=0)   # (B, nhid) f32

    # Per-stream partial logits; combined + log_softmax in the (free) XLA epilogue.
    out_ref[0] = jnp.dot(feat, fc_ref[0],
                         preferred_element_type=jnp.float32).astype(out_ref.dtype)


# ----------------------------------------------------------------------------
# Parameter packing (one-time glue: lane-dense transposes, bf16 cast, stream stack)
# ----------------------------------------------------------------------------
def pack_params(params, mxu_dtype=MXU_DTYPE):
    K = params["tcn_v"][0]["w1"].shape[0]
    nhid = params["fc_w"].shape[1] // 2

    def w_conv_cols(w):                                  # (K, C_out, C_in) -> (C_in, K*C_out)
        Kk, c_out, c_in = w.shape
        return jnp.transpose(w, (2, 0, 1)).reshape(c_in, Kk * c_out)

    flat, layer_cfg = [], []
    for li, (pv, pa) in enumerate(zip(params["tcn_v"], params["tcn_a"])):
        has_ds = "wd" in pv
        layer_cfg.append((2 ** li, has_ds))
        names = ("w1", "b1", "w2", "b2") + (("wd", "bd") if has_ds else ())
        for n in names:
            if n in ("w1", "w2"):
                flat.append(jnp.stack([w_conv_cols(pv[n]),
                                       w_conv_cols(pa[n])]).astype(mxu_dtype))
            elif n == "wd":                              # (1, C_out, C_in) -> (C_in, C_out)
                flat.append(jnp.stack([pv[n][0].T, pa[n][0].T]).astype(mxu_dtype))
            else:                                        # biases stay f32
                flat.append(jnp.stack([pv[n].reshape(1, -1), pa[n].reshape(1, -1)]))

    fc_stack = jnp.stack([params["fc_w"][:, :nhid].T,    # (2, nhid, 2) f32 (tiny, keep f32)
                          params["fc_w"][:, nhid:].T])
    return {
        "tcn_flat": flat,
        "layer_cfg": tuple(layer_cfg),
        "K": K,
        "nhid": nhid,
        "fc_stack": fc_stack,
        "fc_b": params["fc_b"].reshape(1, -1),           # (1, 2)
    }


# ----------------------------------------------------------------------------
# Model forward: ONE pallas_call + a ~8-flop XLA epilogue
# ----------------------------------------------------------------------------
def model_tcn(x_v, x_a, packed):
    B, C0, T = x_v.shape
    nhid = packed["nhid"]

    # Layout glue: (B, C, T) -> lane-dense (B*T, C); stack the two streams.
    xs = jnp.stack([
        jnp.transpose(x_v, (0, 2, 1)).reshape(B * T, C0),
        jnp.transpose(x_a, (0, 2, 1)).reshape(B * T, C0),
    ])                                                   # (2, B*T, C0)

    flat = packed["tcn_flat"]
    kernel = functools.partial(
        _tcn_stream_kernel,
        layer_cfg=packed["layer_cfg"], B=B, T=T, K=packed["K"], mxu_dtype=MXU_DTYPE)

    in_specs = [pl.BlockSpec((1, B * T, C0), lambda s: (s, 0, 0))]
    in_specs += [pl.BlockSpec((1,) + p.shape[1:], lambda s: (s, 0, 0)) for p in flat]
    in_specs += [pl.BlockSpec((1, nhid, 2), lambda s: (s, 0, 0))]

    partials = pl.pallas_call(
        kernel,
        out_shape=jax.ShapeDtypeStruct((2, B, 2), jnp.float32),
        grid_spec=pltpu.PrefetchScalarGridSpec(
            num_scalar_prefetch=0,
            grid=(2,),                                   # one grid step per stream
            in_specs=in_specs,
            out_specs=pl.BlockSpec((1, B, 2), lambda s: (s, 0, 0)),
        ),
        compiler_params=pltpu.CompilerParams(
            dimension_semantics=("parallel",)),          # 2 streams -> 2 TCs on v7x
    )(xs, *flat, packed["fc_stack"])

    # Free XLA epilogue: combine the two per-stream partial logits + bias + log_softmax.
    logits = partials[0] + partials[1] + packed["fc_b"]  # (B, 2)
    return jax.nn.log_softmax(logits, axis=1)


# ----------------------------------------------------------------------------
# Deterministic parameter init (mirrors the PyTorch module's shapes)
# ----------------------------------------------------------------------------
def init_tcn_params(key, num_inputs, nhid, num_layers, ksize):
    layers = []
    in_ch = num_inputs
    for _ in range(num_layers):
        key, k1, k2, k3, k4, k5, k6 = jax.random.split(key, 7)
        p = {
            "w1": 0.01 * jax.random.normal(k1, (ksize, nhid, in_ch), jnp.float32),
            "b1": 0.01 * jax.random.normal(k2, (nhid,), jnp.float32),
            "w2": 0.01 * jax.random.normal(k3, (ksize, nhid, nhid), jnp.float32),
            "b2": 0.01 * jax.random.normal(k4, (nhid,), jnp.float32),
        }
        if in_ch != nhid:
            p["wd"] = 0.01 * jax.random.normal(k5, (1, nhid, in_ch), jnp.float32)
            p["bd"] = 0.01 * jax.random.normal(k6, (nhid,), jnp.float32)
        layers.append(p)
        in_ch = nhid
    return key, layers


def init_params(key, num_layers=2, nhid=128, num_inputs=512, ksize=3):
    key, tcn_v = init_tcn_params(key, num_inputs, nhid, num_layers, ksize)
    key, tcn_a = init_tcn_params(key, num_inputs, nhid, num_layers, ksize)
    key, kw, kb = jax.random.split(key, 3)
    return {
        "tcn_v": tcn_v,
        "tcn_a": tcn_a,
        "fc_w": 0.05 * jax.random.normal(kw, (2, 2 * nhid), jnp.float32),
        "fc_b": 0.05 * jax.random.normal(kb, (2,), jnp.float32),
    }


# ----------------------------------------------------------------------------
# Pure-JAX f32 reference (correctness check of the Pallas kernel)
# ----------------------------------------------------------------------------
def _ref_conv(x, w, b, dilation, relu):
    K = w.shape[0]
    T = x.shape[2]
    pad = (K - 1) * dilation
    xp = jnp.pad(x, ((0, 0), (0, 0), (pad, 0)))
    y = sum(jnp.einsum("oc,bct->bot", w[k], xp[:, :, k * dilation:k * dilation + T])
            for k in range(K)) + b[None, :, None]
    return jnp.maximum(y, 0.0) if relu else y


def _ref_model(x_v, x_a, params):
    def ref_tcn(x, layers):
        for i, p in enumerate(layers):
            d = 2 ** i
            out = _ref_conv(x, p["w1"], p["b1"], d, True)
            out = _ref_conv(out, p["w2"], p["b2"], d, True)
            res = _ref_conv(x, p["wd"], p["bd"], 1, False) if "wd" in p else x
            x = jnp.maximum(out + res, 0.0)
        return x

    hv = ref_tcn(x_v, params["tcn_v"])
    ha = ref_tcn(x_a, params["tcn_a"])
    feat = jnp.concatenate([hv[:, :, -1], ha[:, :, -1]], axis=1)
    logits = feat @ params["fc_w"].T + params["fc_b"]
    return jax.nn.log_softmax(logits, axis=1)


# ----------------------------------------------------------------------------
if __name__ == "__main__":
    B, C_IN, T = 2, 512, 16          # batch=2, input channels fixed at 512 by module, seq=16
    NUM_LAYERS = 2

    key = jax.random.PRNGKey(0)
    params = init_params(key, num_layers=NUM_LAYERS)
    packed = pack_params(params)     # one-time, kernel-ready (lane-dense, bf16, stream-stacked)

    kx = jax.random.PRNGKey(0)
    kv, ka = jax.random.split(kx)
    x_v = jax.random.normal(kv, (B, C_IN, T), jnp.float32)
    x_a = jax.random.normal(ka, (B, C_IN, T), jnp.float32)

    out = jax.block_until_ready(model_tcn(x_v, x_a, packed))
    ref = jax.block_until_ready(_ref_model(x_v, x_a, params))

    # bf16 MXU inputs (f32 accumulate) vs a pure-f32 reference -> widened tolerance.
    tol = 1e-4 if MXU_DTYPE == jnp.float32 else 1e-2
    assert out.shape == (B, 2)
    assert jnp.allclose(out, ref, atol=tol, rtol=tol), (out, ref)
    print("KERNEL_OK")
</pallas_src>

<mosaic_0001>
module attributes {stable_mosaic.version = 11 : i64} {
  func.func @_tcn_stream_kernel(%arg0: i32, %arg1: memref<1x32x512xf32, #tpu.memory_space<vmem>>, %arg2: memref<1x512x384xbf16, #tpu.memory_space<vmem>>, %arg3: memref<1x1x128xf32, #tpu.memory_space<vmem>>, %arg4: memref<1x128x384xbf16, #tpu.memory_space<vmem>>, %arg5: memref<1x1x128xf32, #tpu.memory_space<vmem>>, %arg6: memref<1x512x128xbf16, #tpu.memory_space<vmem>>, %arg7: memref<1x1x128xf32, #tpu.memory_space<vmem>>, %arg8: memref<1x128x384xbf16, #tpu.memory_space<vmem>>, %arg9: memref<1x1x128xf32, #tpu.memory_space<vmem>>, %arg10: memref<1x128x384xbf16, #tpu.memory_space<vmem>>, %arg11: memref<1x1x128xf32, #tpu.memory_space<vmem>>, %arg12: memref<1x128x2xf32, #tpu.memory_space<vmem>>, %arg13: memref<1x2x2xf32, #tpu.memory_space<vmem>>) attributes {dimension_semantics = [#tpu.dimension_semantics<parallel>], iteration_bounds = array<i64: 2>, scalar_prefetch = 0 : i64, scratch_operands = 0 : i64, tpu.core_type = #tpu.core_type<tc>, window_params = [{transform_indices = @transform_0, window_bounds = array<i64: 1, 32, 512>}, {transform_indices = @transform_1, window_bounds = array<i64: 1, 512, 384>}, {transform_indices = @transform_2, window_bounds = array<i64: 1, 1, 128>}, {transform_indices = @transform_3, window_bounds = array<i64: 1, 128, 384>}, {transform_indices = @transform_4, window_bounds = array<i64: 1, 1, 128>}, {transform_indices = @transform_5, window_bounds = array<i64: 1, 512, 128>}, {transform_indices = @transform_6, window_bounds = array<i64: 1, 1, 128>}, {transform_indices = @transform_7, window_bounds = array<i64: 1, 128, 384>}, {transform_indices = @transform_8, window_bounds = array<i64: 1, 1, 128>}, {transform_indices = @transform_9, window_bounds = array<i64: 1, 128, 384>}, {transform_indices = @transform_10, window_bounds = array<i64: 1, 1, 128>}, {transform_indices = @transform_11, window_bounds = array<i64: 1, 128, 2>}, {transform_indices = @transform_12, window_bounds = array<i64: 1, 2, 2>}]} {
    %c0 = arith.constant 0 : index
    %c0_0 = arith.constant 0 : index
    %c0_1 = arith.constant 0 : index
    %0 = vector.load %arg1[%c0, %c0_0, %c0_1] : memref<1x32x512xf32, #tpu.memory_space<vmem>>, vector<1x32x512xf32>
    %1 = vector.shape_cast %0 : vector<1x32x512xf32> to vector<32x512xf32>
    %2 = tpu.iota {dimensions = array<i32: 0>} : vector<32x1xi32>
    %c16_i32 = arith.constant 16 : i32
    %c0_i32 = arith.constant 0 : i32
    %3 = arith.cmpi eq, %c16_i32, %c0_i32 : i32
    %c1_i32 = arith.constant 1 : i32
    %4 = arith.select %3, %c1_i32, %c16_i32 : i32
    %5 = vector.broadcast %4 : i32 to vector<32x1xi32>
    %6 = arith.remsi %2, %5 : vector<32x1xi32>
    %c0_i32_2 = arith.constant 0 : i32
    %7 = vector.broadcast %c0_i32_2 : i32 to vector<32x1xi32>
    %8 = arith.cmpi ne, %6, %7 : vector<32x1xi32>
    %c0_i32_3 = arith.constant 0 : i32
    %9 = vector.broadcast %c0_i32_3 : i32 to vector<32x1xi32>
    %10 = arith.cmpi slt, %6, %9 : vector<32x1xi32>
    %c0_i32_4 = arith.constant 0 : i32
    %11 = arith.cmpi slt, %4, %c0_i32_4 : i32
    %12 = vector.broadcast %11 : i1 to vector<32x1xi1>
    %13 = vector.broadcast %12 : vector<32x1xi1> to vector<32x1xi1>
    %14 = arith.xori %10, %13 : vector<32x1xi1>
    %15 = arith.andi %14, %8 : vector<32x1xi1>
    %16 = vector.broadcast %4 : i32 to vector<32x1xi32>
    %17 = arith.addi %6, %16 : vector<32x1xi32>
    %18 = arith.select %15, %17, %6 : vector<32x1xi1>, vector<32x1xi32>
    %c0_5 = arith.constant 0 : index
    %c0_6 = arith.constant 0 : index
    %c0_7 = arith.constant 0 : index
    %19 = vector.load %arg2[%c0_5, %c0_6, %c0_7] : memref<1x512x384xbf16, #tpu.memory_space<vmem>>, vector<1x512x384xbf16>
    %20 = vector.shape_cast %19 : vector<1x512x384xbf16> to vector<512x384xbf16>
    %c0_8 = arith.constant 0 : index
    %c0_9 = arith.constant 0 : index
    %c0_10 = arith.constant 0 : index
    %21 = vector.load %arg3[%c0_8, %c0_9, %c0_10] : memref<1x1x128xf32, #tpu.memory_space<vmem>>, vector<1x1x128xf32>
    %22 = vector.shape_cast %21 : vector<1x1x128xf32> to vector<1x128xf32>
    %23 = arith.truncf %1 : vector<32x512xf32> to vector<32x512xbf16>
    %cst = arith.constant dense<0.000000e+00> : vector<32x384xf32>
    %24 = tpu.matmul %23, %20, %cst {dimension_numbers = #tpu.dot_dimension_numbers<[1], [0], [0], [1], [0, 0, 1, 1], [], []>} : vector<32x512xbf16>, vector<512x384xbf16>, vector<32x384xf32> -> vector<32x384xf32>
    %25 = vector.extract_strided_slice %24 {offsets = [0, 0], sizes = [32, 128], strides = [1, 1]} : vector<32x384xf32> to vector<32x128xf32>
    %c2_i32 = arith.constant 2 : i32
    %26 = tpu.dynamic_rotate %25 by %c2_i32 dim 0 : vector<32x128xf32>, i32 -> vector<32x128xf32>
    %c2_i32_11 = arith.constant 2 : i32
    %27 = vector.broadcast %c2_i32_11 : i32 to vector<32x1xi32>
    %28 = arith.cmpi sge, %18, %27 : vector<32x1xi32>
    %cst_12 = arith.constant 0.000000e+00 : f32
    %29 = vector.shape_cast %28 : vector<32x1xi1> to vector<32x1xi1>
    %30 = vector.broadcast %29 : vector<32x1xi1> to vector<32x128xi1>
    %31 = vector.broadcast %cst_12 : f32 to vector<32x128xf32>
    %32 = arith.select %30, %26, %31 : vector<32x128xi1>, vector<32x128xf32>
    %33 = vector.extract_strided_slice %24 {offsets = [0, 128], sizes = [32, 128], strides = [1, 1]} : vector<32x384xf32> to vector<32x128xf32>
    %c1_i32_13 = arith.constant 1 : i32
    %34 = tpu.dynamic_rotate %33 by %c1_i32_13 dim 0 : vector<32x128xf32>, i32 -> vector<32x128xf32>
    %c1_i32_14 = arith.constant 1 : i32
    %35 = vector.broadcast %c1_i32_14 : i32 to vector<32x1xi32>
    %36 = arith.cmpi sge, %18, %35 : vector<32x1xi32>
    %cst_15 = arith.constant 0.000000e+00 : f32
    %37 = vector.shape_cast %36 : vector<32x1xi1> to vector<32x1xi1>
    %38 = vector.broadcast %37 : vector<32x1xi1> to vector<32x128xi1>
    %39 = vector.broadcast %cst_15 : f32 to vector<32x128xf32>
    %40 = arith.select %38, %34, %39 : vector<32x128xi1>, vector<32x128xf32>
    %41 = arith.addf %32, %40 : vector<32x128xf32>
    %42 = vector.extract_strided_slice %24 {offsets = [0, 256], sizes = [32, 128], strides = [1, 1]} : vector<32x384xf32> to vector<32x128xf32>
    %43 = arith.addf %41, %42 : vector<32x128xf32>
    %44 = vector.broadcast %22 : vector<1x128xf32> to vector<32x128xf32>
    %45 = arith.addf %43, %44 : vector<32x128xf32>
    %cst_16 = arith.constant 0.000000e+00 : f32
    %46 = vector.broadcast %cst_16 : f32 to vector<32x128xf32>
    %47 = arith.maximumf %45, %46 : vector<32x128xf32>
    %c0_17 = arith.constant 0 : index
    %c0_18 = arith.constant 0 : index
    %c0_19 = arith.constant 0 : index
    %48 = vector.load %arg4[%c0_17, %c0_18, %c0_19] : memref<1x128x384xbf16, #tpu.memory_space<vmem>>, vector<1x128x384xbf16>
    %49 = vector.shape_cast %48 : vector<1x128x384xbf16> to vector<128x384xbf16>
    %c0_20 = arith.constant 0 : index
    %c0_21 = arith.constant 0 : index
    %c0_22 = arith.constant 0 : index
    %50 = vector.load %arg5[%c0_20, %c0_21, %c0_22] : memref<1x1x128xf32, #tpu.memory_space<vmem>>, vector<1x1x128xf32>
    %51 = vector.shape_cast %50 : vector<1x1x128xf32> to vector<1x128xf32>
    %52 = arith.truncf %47 : vector<32x128xf32> to vector<32x128xbf16>
    %cst_23 = arith.constant dense<0.000000e+00> : vector<32x384xf32>
    %53 = tpu.matmul %52, %49, %cst_23 {dimension_numbers = #tpu.dot_dimension_numbers<[1], [0], [0], [1], [0, 0, 1, 1], [], []>} : vector<32x128xbf16>, vector<128x384xbf16>, vector<32x384xf32> -> vector<32x384xf32>
    %54 = vector.extract_strided_slice %53 {offsets = [0, 0], sizes = [32, 128], strides = [1, 1]} : vector<32x384xf32> to vector<32x128xf32>
    %c2_i32_24 = arith.constant 2 : i32
    %55 = tpu.dynamic_rotate %54 by %c2_i32_24 dim 0 : vector<32x128xf32>, i32 -> vector<32x128xf32>
    %c2_i32_25 = arith.constant 2 : i32
    %56 = vector.broadcast %c2_i32_25 : i32 to vector<32x1xi32>
    %57 = arith.cmpi sge, %18, %56 : vector<32x1xi32>
    %cst_26 = arith.constant 0.000000e+00 : f32
    %58 = vector.shape_cast %57 : vector<32x1xi1> to vector<32x1xi1>
    %59 = vector.broadcast %58 : vector<32x1xi1> to vector<32x128xi1>
    %60 = vector.broadcast %cst_26 : f32 to vector<32x128xf32>
    %61 = arith.select %59, %55, %60 : vector<32x128xi1>, vector<32x128xf32>
    %62 = vector.extract_strided_slice %53 {offsets = [0, 128], sizes = [32, 128], strides = [1, 1]} : vector<32x384xf32> to vector<32x128xf32>
    %c1_i32_27 = arith.constant 1 : i32
    %63 = tpu.dynamic_rotate %62 by %c1_i32_27 dim 0 : vector<32x128xf32>, i32 -> vector<32x128xf32>
    %c1_i32_28 = arith.constant 1 : i32
    %64 = vector.broadcast %c1_i32_28 : i32 to vector<32x1xi32>
    %65 = arith.cmpi sge, %18, %64 : vector<32x1xi32>
    %cst_29 = arith.constant 0.000000e+00 : f32
    %66 = vector.shape_cast %65 : vector<32x1xi1> to vector<32x1xi1>
    %67 = vector.broadcast %66 : vector<32x1xi1> to vector<32x128xi1>
    %68 = vector.broadcast %cst_29 : f32 to vector<32x128xf32>
    %69 = arith.select %67, %63, %68 : vector<32x128xi1>, vector<32x128xf32>
    %70 = arith.addf %61, %69 : vector<32x128xf32>
    %71 = vector.extract_strided_slice %53 {offsets = [0, 256], sizes = [32, 128], strides = [1, 1]} : vector<32x384xf32> to vector<32x128xf32>
    %72 = arith.addf %70, %71 : vector<32x128xf32>
    %73 = vector.broadcast %51 : vector<1x128xf32> to vector<32x128xf32>
    %74 = arith.addf %72, %73 : vector<32x128xf32>
    %cst_30 = arith.constant 0.000000e+00 : f32
    %75 = vector.broadcast %cst_30 : f32 to vector<32x128xf32>
    %76 = arith.maximumf %74, %75 : vector<32x128xf32>
    %77 = arith.truncf %1 : vector<32x512xf32> to vector<32x512xbf16>
    %c0_31 = arith.constant 0 : index
    %c0_32 = arith.constant 0 : index
    %c0_33 = arith.constant 0 : index
    %78 = vector.load %arg6[%c0_31, %c0_32, %c0_33] : memref<1x512x128xbf16, #tpu.memory_space<vmem>>, vector<1x512x128xbf16>
    %79 = vector.shape_cast %78 : vector<1x512x128xbf16> to vector<512x128xbf16>
    %cst_34 = arith.constant dense<0.000000e+00> : vector<32x128xf32>
    %80 = tpu.matmul %77, %79, %cst_34 {dimension_numbers = #tpu.dot_dimension_numbers<[1], [0], [0], [1], [0, 0, 1, 1], [], []>} : vector<32x512xbf16>, vector<512x128xbf16>, vector<32x128xf32> -> vector<32x128xf32>
    %c0_35 = arith.constant 0 : index
    %c0_36 = arith.constant 0 : index
    %c0_37 = arith.constant 0 : index
    %81 = vector.load %arg7[%c0_35, %c0_36, %c0_37] : memref<1x1x128xf32, #tpu.memory_space<vmem>>, vector<1x1x128xf32>
    %82 = vector.shape_cast %81 : vector<1x1x128xf32> to vector<1x128xf32>
    %83 = vector.broadcast %82 : vector<1x128xf32> to vector<32x128xf32>
    %84 = arith.addf %80, %83 : vector<32x128xf32>
    %85 = arith.addf %76, %84 : vector<32x128xf32>
    %cst_38 = arith.constant 0.000000e+00 : f32
    %86 = vector.broadcast %cst_38 : f32 to vector<32x128xf32>
    %87 = arith.maximumf %85, %86 : vector<32x128xf32>
    %c0_39 = arith.constant 0 : index
    %c0_40 = arith.constant 0 : index
    %c0_41 = arith.constant 0 : index
    %88 = vector.load %arg8[%c0_39, %c0_40, %c0_41] : memref<1x128x384xbf16, #tpu.memory_space<vmem>>, vector<1x128x384xbf16>
    %89 = vector.shape_cast %88 : vector<1x128x384xbf16> to vector<128x384xbf16>
    %c0_42 = arith.constant 0 : index
    %c0_43 = arith.constant 0 : index
    %c0_44 = arith.constant 0 : index
    %90 = vector.load %arg9[%c0_42, %c0_43, %c0_44] : memref<1x1x128xf32, #tpu.memory_space<vmem>>, vector<1x1x128xf32>
    %91 = vector.shape_cast %90 : vector<1x1x128xf32> to vector<1x128xf32>
    %92 = arith.truncf %87 : vector<32x128xf32> to vector<32x128xbf16>
    %cst_45 = arith.constant dense<0.000000e+00> : vector<32x384xf32>
    %93 = tpu.matmul %92, %89, %cst_45 {dimension_numbers = #tpu.dot_dimension_numbers<[1], [0], [0], [1], [0, 0, 1, 1], [], []>} : vector<32x128xbf16>, vector<128x384xbf16>, vector<32x384xf32> -> vector<32x384xf32>
    %94 = vector.extract_strided_slice %93 {offsets = [0, 0], sizes = [32, 128], strides = [1, 1]} : vector<32x384xf32> to vector<32x128xf32>
    %c4_i32 = arith.constant 4 : i32
    %95 = tpu.dynamic_rotate %94 by %c4_i32 dim 0 : vector<32x128xf32>, i32 -> vector<32x128xf32>
    %c4_i32_46 = arith.constant 4 : i32
    %96 = vector.broadcast %c4_i32_46 : i32 to vector<32x1xi32>
    %97 = arith.cmpi sge, %18, %96 : vector<32x1xi32>
    %cst_47 = arith.constant 0.000000e+00 : f32
    %98 = vector.shape_cast %97 : vector<32x1xi1> to vector<32x1xi1>
    %99 = vector.broadcast %98 : vector<32x1xi1> to vector<32x128xi1>
    %100 = vector.broadcast %cst_47 : f32 to vector<32x128xf32>
    %101 = arith.select %99, %95, %100 : vector<32x128xi1>, vector<32x128xf32>
    %102 = vector.extract_strided_slice %93 {offsets = [0, 128], sizes = [32, 128], strides = [1, 1]} : vector<32x384xf32> to vector<32x128xf32>
    %c2_i32_48 = arith.constant 2 : i32
    %103 = tpu.dynamic_rotate %102 by %c2_i32_48 dim 0 : vector<32x128xf32>, i32 -> vector<32x128xf32>
    %c2_i32_49 = arith.constant 2 : i32
    %104 = vector.broadcast %c2_i32_49 : i32 to vector<32x1xi32>
    %105 = arith.cmpi sge, %18, %104 : vector<32x1xi32>
    %cst_50 = arith.constant 0.000000e+00 : f32
    %106 = vector.shape_cast %105 : vector<32x1xi1> to vector<32x1xi1>
    %107 = vector.broadcast %106 : vector<32x1xi1> to vector<32x128xi1>
    %108 = vector.broadcast %cst_50 : f32 to vector<32x128xf32>
    %109 = arith.select %107, %103, %108 : vector<32x128xi1>, vector<32x128xf32>
    %110 = arith.addf %101, %109 : vector<32x128xf32>
    %111 = vector.extract_strided_slice %93 {offsets = [0, 256], sizes = [32, 128], strides = [1, 1]} : vector<32x384xf32> to vector<32x128xf32>
    %112 = arith.addf %110, %111 : vector<32x128xf32>
    %113 = vector.broadcast %91 : vector<1x128xf32> to vector<32x128xf32>
    %114 = arith.addf %112, %113 : vector<32x128xf32>
    %cst_51 = arith.constant 0.000000e+00 : f32
    %115 = vector.broadcast %cst_51 : f32 to vector<32x128xf32>
    %116 = arith.maximumf %114, %115 : vector<32x128xf32>
    %c0_52 = arith.constant 0 : index
    %c0_53 = arith.constant 0 : index
    %c0_54 = arith.constant 0 : index
    %117 = vector.load %arg10[%c0_52, %c0_53, %c0_54] : memref<1x128x384xbf16, #tpu.memory_space<vmem>>, vector<1x128x384xbf16>
    %118 = vector.shape_cast %117 : vector<1x128x384xbf16> to vector<128x384xbf16>
    %c0_55 = arith.constant 0 : index
    %c0_56 = arith.constant 0 : index
    %c0_57 = arith.constant 0 : index
    %119 = vector.load %arg11[%c0_55, %c0_56, %c0_57] : memref<1x1x128xf32, #tpu.memory_space<vmem>>, vector<1x1x128xf32>
    %120 = vector.shape_cast %119 : vector<1x1x128xf32> to vector<1x128xf32>
    %121 = arith.truncf %116 : vector<32x128xf32> to vector<32x128xbf16>
    %cst_58 = arith.constant dense<0.000000e+00> : vector<32x384xf32>
    %122 = tpu.matmul %121, %118, %cst_58 {dimension_numbers = #tpu.dot_dimension_numbers<[1], [0], [0], [1], [0, 0, 1, 1], [], []>} : vector<32x128xbf16>, vector<128x384xbf16>, vector<32x384xf32> -> vector<32x384xf32>
    %123 = vector.extract_strided_slice %122 {offsets = [0, 0], sizes = [32, 128], strides = [1, 1]} : vector<32x384xf32> to vector<32x128xf32>
    %c4_i32_59 = arith.constant 4 : i32
    %124 = tpu.dynamic_rotate %123 by %c4_i32_59 dim 0 : vector<32x128xf32>, i32 -> vector<32x128xf32>
    %c4_i32_60 = arith.constant 4 : i32
    %125 = vector.broadcast %c4_i32_60 : i32 to vector<32x1xi32>
    %126 = arith.cmpi sge, %18, %125 : vector<32x1xi32>
    %cst_61 = arith.constant 0.000000e+00 : f32
    %127 = vector.shape_cast %126 : vector<32x1xi1> to vector<32x1xi1>
    %128 = vector.broadcast %127 : vector<32x1xi1> to vector<32x128xi1>
    %129 = vector.broadcast %cst_61 : f32 to vector<32x128xf32>
    %130 = arith.select %128, %124, %129 : vector<32x128xi1>, vector<32x128xf32>
    %131 = vector.extract_strided_slice %122 {offsets = [0, 128], sizes = [32, 128], strides = [1, 1]} : vector<32x384xf32> to vector<32x128xf32>
    %c2_i32_62 = arith.constant 2 : i32
    %132 = tpu.dynamic_rotate %131 by %c2_i32_62 dim 0 : vector<32x128xf32>, i32 -> vector<32x128xf32>
    %c2_i32_63 = arith.constant 2 : i32
    %133 = vector.broadcast %c2_i32_63 : i32 to vector<32x1xi32>
    %134 = arith.cmpi sge, %18, %133 : vector<32x1xi32>
    %cst_64 = arith.constant 0.000000e+00 : f32
    %135 = vector.shape_cast %134 : vector<32x1xi1> to vector<32x1xi1>
    %136 = vector.broadcast %135 : vector<32x1xi1> to vector<32x128xi1>
    %137 = vector.broadcast %cst_64 : f32 to vector<32x128xf32>
    %138 = arith.select %136, %132, %137 : vector<32x128xi1>, vector<32x128xf32>
    %139 = arith.addf %130, %138 : vector<32x128xf32>
    %140 = vector.extract_strided_slice %122 {offsets = [0, 256], sizes = [32, 128], strides = [1, 1]} : vector<32x384xf32> to vector<32x128xf32>
    %141 = arith.addf %139, %140 : vector<32x128xf32>
    %142 = vector.broadcast %120 : vector<1x128xf32> to vector<32x128xf32>
    %143 = arith.addf %141, %142 : vector<32x128xf32>
    %cst_65 = arith.constant 0.000000e+00 : f32
    %144 = vector.broadcast %cst_65 : f32 to vector<32x128xf32>
    %145 = arith.maximumf %143, %144 : vector<32x128xf32>
    %146 = arith.addf %145, %87 : vector<32x128xf32>
    %cst_66 = arith.constant 0.000000e+00 : f32
    %147 = vector.broadcast %cst_66 : f32 to vector<32x128xf32>
    %148 = arith.maximumf %146, %147 : vector<32x128xf32>
    %149 = vector.extract_strided_slice %148 {offsets = [15, 0], sizes = [1, 128], strides = [1, 1]} : vector<32x128xf32> to vector<1x128xf32>
    %150 = vector.extract_strided_slice %148 {offsets = [31, 0], sizes = [1, 128], strides = [1, 1]} : vector<32x128xf32> to vector<1x128xf32>
    %151 = tpu.concatenate %149, %150 in 0 : vector<1x128xf32>, vector<1x128xf32> -> vector<2x128xf32>
    %c0_67 = arith.constant 0 : index
    %c0_68 = arith.constant 0 : index
    %c0_69 = arith.constant 0 : index
    %152 = vector.load %arg12[%c0_67, %c0_68, %c0_69] : memref<1x128x2xf32, #tpu.memory_space<vmem>>, vector<1x128x2xf32>
    %153 = vector.shape_cast %152 : vector<1x128x2xf32> to vector<128x2xf32>
    %cst_70 = arith.constant dense<0.000000e+00> : vector<2x2xf32>
    %154 = tpu.matmul %151, %153, %cst_70 {dimension_numbers = #tpu.dot_dimension_numbers<[1], [0], [0], [1], [0, 0, 1, 1], [], []>} : vector<2x128xf32>, vector<128x2xf32>, vector<2x2xf32> -> vector<2x2xf32>
    %c0_71 = arith.constant 0 : index
    %c0_72 = arith.constant 0 : index
    %c0_73 = arith.constant 0 : index
    %155 = vector.load %arg13[%c0_71, %c0_72, %c0_73] : memref<1x2x2xf32, #tpu.memory_space<vmem>>, vector<1x2x2xf32>
    %156 = vector.shape_cast %155 : vector<1x2x2xf32> to vector<2x2xf32>
    %157 = vector.shape_cast %154 : vector<2x2xf32> to vector<1x2x2xf32>
    tpu.vector_store %arg13[%c0_71, %c0_72, %c0_73], %157 {strides = array<i32>} : memref<1x2x2xf32, #tpu.memory_space<vmem>>, vector<1x2x2xf32>,
    return
  }
  func.func @transform_0(%arg0: i32) -> (i32, i32, i32) {
    %c0_i32 = arith.constant 0 : i32
    %c0_i32_0 = arith.constant 0 : i32
    %c0_i32_1 = arith.constant 0 : i32
    return %arg0, %c0_i32, %c0_i32_0 : i32, i32, i32
  }
  func.func @transform_1(%arg0: i32) -> (i32, i32, i32) {
    %c0_i32 = arith.constant 0 : i32
    %c0_i32_0 = arith.constant 0 : i32
    %c0_i32_1 = arith.constant 0 : i32
    return %arg0, %c0_i32, %c0_i32_0 : i32, i32, i32
  }
  func.func @transform_2(%arg0: i32) -> (i32, i32, i32) {
    %c0_i32 = arith.constant 0 : i32
    %c0_i32_0 = arith.constant 0 : i32
    %c0_i32_1 = arith.constant 0 : i32
    return %arg0, %c0_i32, %c0_i32_0 : i32, i32, i32
  }
  func.func @transform_3(%arg0: i32) -> (i32, i32, i32) {
    %c0_i32 = arith.constant 0 : i32
    %c0_i32_0 = arith.constant 0 : i32
    %c0_i32_1 = arith.constant 0 : i32
    return %arg0, %c0_i32, %c0_i32_0 : i32, i32, i32
  }
  func.func @transform_4(%arg0: i32) -> (i32, i32, i32) {
    %c0_i32 = arith.constant 0 : i32
    %c0_i32_0 = arith.constant 0 : i32
    %c0_i32_1 = arith.constant 0 : i32
    return %arg0, %c0_i32, %c0_i32_0 : i32, i32, i32
  }
  func.func @transform_5(%arg0: i32) -> (i32, i32, i32) {
    %c0_i32 = arith.constant 0 : i32
    %c0_i32_0 = arith.constant 0 : i32
    %c0_i32_1 = arith.constant 0 : i32
    return %arg0, %c0_i32, %c0_i32_0 : i32, i32, i32
  }
  func.func @transform_6(%arg0: i32) -> (i32, i32, i32) {
    %c0_i32 = arith.constant 0 : i32
    %c0_i32_0 = arith.constant 0 : i32
    %c0_i32_1 = arith.constant 0 : i32
    return %arg0, %c0_i32, %c0_i32_0 : i32, i32, i32
  }
  func.func @transform_7(%arg0: i32) -> (i32, i32, i32) {
    %c0_i32 = arith.constant 0 : i32
    %c0_i32_0 = arith.constant 0 : i32
    %c0_i32_1 = arith.constant 0 : i32
    return %arg0, %c0_i32, %c0_i32_0 : i32, i32, i32
  }
  func.func @transform_8(%arg0: i32) -> (i32, i32, i32) {
    %c0_i32 = arith.constant 0 : i32
    %c0_i32_0 = arith.constant 0 : i32
    %c0_i32_1 = arith.constant 0 : i32
    return %arg0, %c0_i32, %c0_i32_0 : i32, i32, i32
  }
  func.func @transform_9(%arg0: i32) -> (i32, i32, i32) {
    %c0_i32 = arith.constant 0 : i32
    %c0_i32_0 = arith.constant 0 : i32
    %c0_i32_1 = arith.constant 0 : i32
    return %arg0, %c0_i32, %c0_i32_0 : i32, i32, i32
  }
  func.func @transform_10(%arg0: i32) -> (i32, i32, i32) {
    %c0_i32 = arith.constant 0 : i32
    %c0_i32_0 = arith.constant 0 : i32
    %c0_i32_1 = arith.constant 0 : i32
    return %arg0, %c0_i32, %c0_i32_0 : i32, i32, i32
  }
  func.func @transform_11(%arg0: i32) -> (i32, i32, i32) {
    %c0_i32 = arith.constant 0 : i32
    %c0_i32_0 = arith.constant 0 : i32
    %c0_i32_1 = arith.constant 0 : i32
    return %arg0, %c0_i32, %c0_i32_0 : i32, i32, i32
  }
  func.func @transform_12(%arg0: i32) -> (i32, i32, i32) {
    %c0_i32 = arith.constant 0 : i32
    %c0_i32_0 = arith.constant 0 : i32
    %c0_i32_1 = arith.constant 0 : i32
    return %arg0, %c0_i32, %c0_i32_0 : i32, i32, i32
  }
}

</mosaic_0001>

<bundles_post_ra>
// kernel: tpu_custom_call.1
= control target key start
LH: loop header
LB: loop body
LE: loop exit
PB: predicated region body
PF: predicated region fallthrough
CT: control target
= control target key end

     0   :  { %s5210_s0 = inlined_call_operand.vmem [shape: f32[2,32,512], index: 0, kind: input, shape index: {}]   ;;  %s5211_s1 = inlined_call_operand.hbm [shape: bf16[2,512,384], index: 1, kind: input, shape index: {}]   ;;  %s5212_s2 = inlined_call_operand.vmem [shape: f32[2,1,128], index: 2, kind: input, shape index: {}]   ;;  %s5213_s3 = inlined_call_operand.hbm [shape: bf16[2,128,384], index: 3, kind: input, shape index: {}]   ;;  %s5214_s4 = inlined_call_operand.vmem [shape: f32[2,1,128], index: 4, kind: input, shape index: {}]   ;;  %s5215_s5 = inlined_call_operand.hbm [shape: bf16[2,512,128], index: 5, kind: input, shape index: {}]   ;;  %s5216_s6 = inlined_call_operand.vmem [shape: f32[2,1,128], index: 6, kind: input, shape index: {}]   ;;  %s5217_s7 = inlined_call_operand.hbm [shape: bf16[2,128,384], index: 7, kind: input, shape index: {}]   ;;  %s5218_s8 = inlined_call_operand.vmem [shape: f32[2,1,128], index: 8, kind: input, shape index: {}]   ;;  %s5219_s9 = inlined_call_operand.hbm [shape: bf16[2,128,384], index: 9, kind: input, shape index: {}]   ;;  %s5220_s10 = inlined_call_operand.vmem [shape: f32[2,1,128], index: 10, kind: input, shape index: {}]   ;;  %s5221_s11 = inlined_call_operand.vmem [shape: f32[2,128,2], index: 11, kind: input, shape index: {}]   ;;  %s5222_s12 = inlined_call_operand.hbm [shape: f32[2,2,2], index: 12, kind: output, shape index: {}]  }
   0x1   :  { %5237 = sst [smem:[#allocation22_spill]] %s5212_s2 }
   0x2   :  { %5238 = sst [smem:[#allocation23_spill]] %s5213_s3 }
   0x3   :  { %5239 = sst [smem:[#allocation24_spill]] %s5214_s4 }
   0x4   :  { %5240 = sst [smem:[#allocation25_spill]] %s5216_s6 }
   0x5   :  { %5241 = sst [smem:[#allocation26_spill]] %s5217_s7 }
   0x6   :  { %5242 = sst [smem:[#allocation27_spill]] %s5218_s8 }
   0x7   :  { %5243 = sst [smem:[#allocation28_spill]] %s5220_s10 }
   0x8   :  { %5244 = sst [smem:[#allocation29_spill]] %s5221_s11 }
   0x9   :  { %5245 = sst [smem:[#allocation30_spill]] %s5222_s12 }
   0xa   :  { %17 = vsyncpa [#allocation3], 0 }
   0xb   :  { %19 = vsyncpa [#allocation3 + $0x1], 0 }
   0xc   :  { %20 = vsyncpa [#allocation6], 0 }
   0xd   :  { %22 = vsyncpa [#allocation6 + $0x1], 0 }
   0xe   :  { %23 = vsyncpa [#allocation9], 0 }
   0xf   :  { %25 = vsyncpa [#allocation9 + $0x1], 0 }
  0x10   :  { %26 = vsyncpa [#allocation4], 0 }
  0x11   :  { %28 = vsyncpa [#allocation4 + $0x1], 0  ;;  %s4441_s21 = smov 0   ;;  %s4443_s22 = smov 0  }
  0x12   :  { %s4445_s23 = smov 0   ;;  %s4447_s24 = smov 0  }
  0x13 LB: > { %5246 = sst [smem:[#allocation16_spill]] %s4349_s21  ;;  %s4462_s25 = sadd.s32 4294967295, %s4361_s24   ;;  %s4361_s24 = sphi %s4447_s24, %s5281_s24   ;;  %s4357_s23 = sphi %s4445_s23, %s5283_s23   ;;  %s4353_s22 = sphi %s4443_s22, %s5285_s22   ;;  %s4349_s21 = sphi %s4441_s21, %s5284_s21  }
  0x14   : > { %5247 = sst [smem:[#allocation17_spill]] %s4357_s23  ;;  %s3327_s26 = sadd.s32 4294967294, %s4361_s24  }
  0x15   : > { %s4466_s27 = sadd.s32 1, %s4361_s24   ;;  %s67_s28 = sadd.s32 1, %s4357_s23 }
  0x16   : > { %5248 = sst [smem:[#allocation18_spill]] %s4466_s27  ;;  %s64_s29 = ssub.s32 %s4361_s24, %s4466_s27 }
  0x17   : > { %p74_p0 = scmp.ne.s32.totalorder %s4357_s23, %s4353_s22  ;;  %p65_p1 = scmp.eq.s32.totalorder %s64_s29, 0 }
  0x18   : > { %p75_p2 = scmp.eq.s32.totalorder %s4361_s24, 0  ;;  %p80_p3 = scmp.ne.s32.totalorder %s4353_s22, %s4349_s21 }
  0x19   : > { %p81_p4 = scmp.eq.s32.totalorder %s4462_s25, 0  ;;  %p364_p7 = scmp.eq.s32.totalorder %s4462_s25, 1 }
  0x1a   : > { %s4478_s30 = scalar_select %p65_p1, %s4357_s23, %s67_s28  }
  0x1b   : > { %p76_p5 = por %p75_p2, %p74_p0  ;;  %p4480_p6 = por %p81_p4, %p80_p3 }
  0x1c   : > { %5249 = sst [smem:[#allocation19_spill]] %s4478_s30  ;;  %p370_p8 = scmp.eq.s32.totalorder %s3327_s26, 1 }
  0x1d   : > { %s5250_s13 = scalar_select %p4480_p6, 1, 0 }
  0x1e   : > { %p3852_p10 = scmp.lt.s32.totalorder %s4361_s24, 2  ;;  %p4487_p11 = por %p364_p7, %p74_p0 }
  0x1f   : > { %p4491_p12 = por %p370_p8, %p80_p3  ;;  %s4496_s16 = sand.u32 1, %s4357_s23  }
  0x20   : > { %s5251_s14 = scalar_select %p4487_p11, 1, 0 }
  0x21   : > { %s5253_s15 = scalar_select %p4491_p12, 1, 0 }
  0x22   : > { %5252 = sst [smem:[#allocation20_spill]] %s5251_s14  ;;  %p4498_p13 = pnand %p3852_p10, %p76_p5 }
  0x23   : > { %5254 = sst [smem:[#allocation21_spill]] %s5253_s15  ;;  %s4504_s19 = smul.u32 192, %s4496_s16 }
  0x24   : > { %s4507_s20 = smul.u32 3072, %s4361_s24  ;;  %p3337_p0 = scmp.ge.s32.totalorder %s4361_s24, 1 }
  0x25   : > { %p539_p1 = scmp.lt.s32.totalorder %s4361_s24, 3  ;;  %s5256_s3 = sld [smem:[#allocation23_spill]] }
  0x26   : > { %s429_s30 = scalar_lea.vmem [#allocation5], %s4504_s19  ;;  %s5258_s27 = sand.u32 1, %s4361_s24  }
  0x27   : > { %s436_s23 = sshll.u32 %s429_s30, 4  ;;  %p4520_p2 = pnand %p3337_p0, %p539_p1  ;;  %s4518_s23 = int_to_ptr.vmem [resolvable:$true] %s436_s23 }
  0x28   : > { %s4526_s15 = scalar_lea.sflag [#allocation6], %s5258_s27  ;;  %p4532_p4 = pneg %p4498_p13 }
  0x29   : > { %s5257_s18 = scalar_select %p4520_p2, 1, 0 }
  0x2b   : > { %s4515_s29 = scalar_lea.hbm %s5256_s3, %s4507_s20  ;;  %s4154_s12 = scalar_lea.hbm %s5256_s3, 6144 }
  0x2c   : > { %s4149_s21 = scalar_lea.hbm %s4515_s29, 3072  ;;  %p4155_p8 = scmp.lt.s32.totalorder %s4515_s29, %s5256_s3 }
  0x2d   : > { %p4150_p3 = scmp.ne.s32.totalorder %s4515_s29, %s4149_s21  ;;  %p4156_p10 = scmp.lt.s32.totalorder %s4154_s12, %s4149_s21 }
  0x2f   : > { %p4152_p5 = pnand %p4532_p4, %p4150_p3  ;;  %p4157_p0 = por %p4156_p10, %p4155_p8 }
  0x31   : > { %p4153_p7 = pneg %p4152_p5 }
  0x33   : > { %p4158_p1 = pnand %p4157_p0, %p4153_p7 }
  0x35   : > { %4161 = shalt.err (!%p4158_p1)
}
  0x36   : > { %s4162_s27 = scalar_lea.vmem %s4518_s23, 3072  ;;  %s4363_s11 = smov [#allocation5]  }
  0x37   : > { %p4163_p9 = scmp.ne.s32.totalorder %s4518_s23, %s4162_s27  ;;  %s4167_s30 = sshll.u32 %s4363_s11, 4  ;;  %s4168_s30 = int_to_ptr.vmem [resolvable:$false] %s4167_s30 }
  0x38   : > { %s4169_s28 = scalar_lea.vmem %s4168_s30, 6144  ;;  %p4170_p12 = scmp.lt.s32.totalorder %s4518_s23, %s4168_s30 }
  0x39   : > { %p4165_p3 = pnand %p4163_p9, %p4532_p4  ;;  %p4171_p11 = scmp.lt.s32.totalorder %s4169_s28, %s4162_s27 }
  0x3b   : > { %p4166_p5 = pneg %p4165_p3  ;;  %p4172_p6 = por %p4171_p11, %p4170_p12 }
  0x3d   : > { %p4173_p2 = pnand %p4172_p6, %p4166_p5 }
  0x3f   : > { %4176 = shalt.err (!%p4173_p2)
}
  0x40   : > { %s5233_s10 = smov 192   ;;  %s5235_s12 = smov 12  }
  0x41   : > { %3838 = dma.hbm_to_vmem [thread:$0]  (!%p4498_p13), %s4515_s29, 3072, %s4518_s23, %s4526_s15, %s5233_s10, %s5233_s10, %s5235_s12  }
  0x42   : > { %s5260_s7 = sld [smem:[#allocation26_spill]]  ;;  %s483_s27 = scalar_lea.vmem [#allocation8], %s4504_s19 }
  0x43   : > { %s490_s30 = sshll.u32 %s483_s27, 4  ;;  %s5261_s28 = sand.u32 1, %s4361_s24   ;;  %s4565_s30 = int_to_ptr.vmem [resolvable:$true] %s490_s30 }
  0x44   : > { %s4569_s3 = scalar_lea.sflag [#allocation9], %s5261_s28 }
  0x48   : > { %s4562_s14 = scalar_lea.hbm %s5260_s7, %s4507_s20  ;;  %s4182_s11 = scalar_lea.hbm %s5260_s7, 6144 }
  0x49   : > { %s4177_s8 = scalar_lea.hbm %s4562_s14, 3072  ;;  %p4183_p12 = scmp.lt.s32.totalorder %s4562_s14, %s5260_s7 }
  0x4a   : > { %p4178_p6 = scmp.ne.s32.totalorder %s4562_s14, %s4177_s8  ;;  %p4184_p2 = scmp.lt.s32.totalorder %s4182_s11, %s4177_s8 }
  0x4c   : > { %p4180_p9 = pnand %p4178_p6, %p4532_p4  ;;  %p4185_p7 = por %p4184_p2, %p4183_p12 }
  0x4e   : > { %p4181_p11 = pneg %p4180_p9 }
  0x50   : > { %p4186_p8 = pnand %p4185_p7, %p4181_p11 }
  0x52   : > { %4189 = shalt.err (!%p4186_p8)
}
  0x53   : > { %s4190_s27 = scalar_lea.vmem %s4565_s30, 3072  ;;  %s4366_s28 = smov [#allocation8]  }
  0x54   : > { %p4191_p10 = scmp.ne.s32.totalorder %s4565_s30, %s4190_s27  ;;  %s4195_s23 = sshll.u32 %s4366_s28, 4  ;;  %s4196_s23 = int_to_ptr.vmem [resolvable:$false] %s4195_s23 }
  0x55   : > { %s4197_s29 = scalar_lea.vmem %s4196_s23, 6144  ;;  %p4198_p3 = scmp.lt.s32.totalorder %s4565_s30, %s4196_s23 }
  0x56   : > { %p4193_p0 = pnand %p4191_p10, %p4532_p4  ;;  %p4199_p5 = scmp.lt.s32.totalorder %s4197_s29, %s4190_s27 }
  0x58   : > { %p4194_p1 = pneg %p4193_p0  ;;  %p4200_p6 = por %p4199_p5, %p4198_p3 }
  0x5a   : > { %p4201_p9 = pnand %p4200_p6, %p4194_p1 }
  0x5c   : > { %4204 = shalt.err (!%p4201_p9)
}
  0x5d   : > { %s5262_s8 = smov 192   ;;  %s3810_s10 = smul.u32 768, %s4496_s16 }
  0x5e   : > { %3844 = dma.hbm_to_vmem [thread:$0]  (!%p4498_p13), %s4562_s14, 3072, %s4565_s30, %s4569_s3, %s5262_s8, %s5262_s8, %s5235_s12  }
  0x5f   : > { %s3811_s21 = smul.u32 12288, %s4361_s24  ;;  %s3553_s27 = sshll.u32 %s4361_s24, 12 }
  0x60   : > { %s402_s7 = scalar_lea.vmem [#allocation2], %s3810_s10  ;;  %s4609_s14 = scalar_lea.hbm %s5215_s5, %s3553_s27 }
  0x61   : > { %s4602_s29 = scalar_lea.hbm %s5211_s1, %s3811_s21  ;;  %s409_s4 = sshll.u32 %s402_s7, 4  ;;  %s4604_s4 = int_to_ptr.vmem [resolvable:$true] %s409_s4 }
  0x62   : > { %s399_s30 = scalar_lea.sflag [#allocation3], %s4496_s16  ;;  %s4205_s11 = scalar_lea.hbm %s4602_s29, 12288 }
  0x63   : > { %p4206_p11 = scmp.ne.s32.totalorder %s4602_s29, %s4205_s11  ;;  %s4210_s23 = scalar_lea.hbm %s5211_s1, 24576 }
  0x64   : > { %p4211_p7 = scmp.lt.s32.totalorder %s4602_s29, %s5211_s1  ;;  %p4212_p8 = scmp.lt.s32.totalorder %s4210_s23, %s4205_s11 }
  0x65   : > { %p4208_p12 = pnand %p4206_p11, %p4532_p4 }
  0x66   : > { %p4213_p10 = por %p4212_p8, %p4211_p7 }
  0x67   : > { %p4209_p2 = pneg %p4208_p12 }
  0x69   : > { %p4214_p0 = pnand %p4213_p10, %p4209_p2 }
  0x6b   : > { %4217 = shalt.err (!%p4214_p0)
}
  0x6c   : > { %s4218_s2 = scalar_lea.vmem %s4604_s4, 12288  ;;  %s4367_s6 = smov [#allocation2]  }
  0x6d   : > { %p4219_p1 = scmp.ne.s32.totalorder %s4604_s4, %s4218_s2  ;;  %s4223_s7 = sshll.u32 %s4367_s6, 4  ;;  %s4224_s7 = int_to_ptr.vmem [resolvable:$false] %s4223_s7 }
  0x6e   : > { %s4225_s27 = scalar_lea.vmem %s4224_s7, 24576  ;;  %p4226_p6 = scmp.lt.s32.totalorder %s4604_s4, %s4224_s7 }
  0x6f   : > { %p4221_p3 = pnand %p4219_p1, %p4532_p4  ;;  %p4227_p9 = scmp.lt.s32.totalorder %s4225_s27, %s4218_s2 }
  0x71   : > { %p4222_p5 = pneg %p4221_p3  ;;  %p4228_p11 = por %p4227_p9, %p4226_p6 }
  0x73   : > { %p4229_p12 = pnand %p4228_p11, %p4222_p5 }
  0x75   : > { %4232 = shalt.err (!%p4229_p12)
}
  0x76   : > { %s5263_s12 = smov 12   ;;  %s5264_s11 = sshll.u32 %s4496_s16, 8 }
  0x77   : > { %3835 = dma.hbm_to_vmem [thread:$0]  (!%p4498_p13), %s4602_s29, 12288, %s4604_s4, %s399_s30, %s5262_s8, %s5262_s8, %s5263_s12  }
  0x78   : > { %s456_s21 = scalar_lea.vmem [#allocation7], %s5264_s11  ;;  %s4233_s23 = scalar_lea.hbm %s4609_s14, 4096 }
  0x79   : > { %s463_s28 = sshll.u32 %s456_s21, 4  ;;  %p4234_p2 = scmp.ne.s32.totalorder %s4609_s14, %s4233_s23  ;;  %s4637_s28 = int_to_ptr.vmem [resolvable:$true] %s463_s28 }
  0x7a   : > { %s4238_s6 = scalar_lea.hbm %s5215_s5, 8192  ;;  %p4239_p10 = scmp.lt.s32.totalorder %s4609_s14, %s5215_s5 }
  0x7b   : > { %p4236_p7 = pnand %p4234_p2, %p4532_p4  ;;  %p4240_p0 = scmp.lt.s32.totalorder %s4238_s6, %s4233_s23 }
  0x7d   : > { %p4237_p8 = pneg %p4236_p7  ;;  %p4241_p1 = por %p4240_p0, %p4239_p10 }
  0x7f   : > { %p4242_p3 = pnand %p4241_p1, %p4237_p8 }
  0x81   : > { %4245 = shalt.err (!%p4242_p3)
}
  0x82   : > { %s4246_s4 = scalar_lea.vmem %s4637_s28, 4096  ;;  %s4368_s16 = smov [#allocation7]  }
  0x83   : > { %p4247_p5 = scmp.ne.s32.totalorder %s4637_s28, %s4246_s4  ;;  %s4251_s29 = sshll.u32 %s4368_s16, 4  ;;  %s4252_s29 = int_to_ptr.vmem [resolvable:$false] %s4251_s29 }
  0x84   : > { %s4253_s30 = scalar_lea.vmem %s4252_s29, 8192  ;;  %p4254_p11 = scmp.lt.s32.totalorder %s4637_s28, %s4252_s29 }
  0x85   : > { %p4249_p6 = pnand %p4247_p5, %p4532_p4  ;;  %p4255_p12 = scmp.lt.s32.totalorder %s4253_s30, %s4246_s4 }
  0x87   : > { %p4250_p9 = pneg %p4249_p6  ;;  %p4256_p2 = por %p4255_p12, %p4254_p11 }
  0x89   : > { %p4257_p7 = pnand %p4256_p2, %p4250_p9 }
  0x8b   : > { %4260 = shalt.err (!%p4257_p7)
}
  0x8c   : > { %s4369_s11 = smov 64   ;;  %s4370_s21 = smov 4  }
  0x8d   : > { %3841 = dma.hbm_to_vmem [thread:$0]  (!%p4498_p13), %s4609_s14, 4096, %s4637_s28, %s4526_s15, %s4369_s11, %s4369_s11, %s4370_s21  }
  0x8e   : > { %s4664_s2 = scalar_lea.hbm %s5219_s9, %s4507_s20  ;;  %s510_s6 = scalar_lea.vmem [#allocation10], %s4504_s19 }
  0x8f   : > { %s517_s7 = sshll.u32 %s510_s6, 4  ;;  %s4261_s27 = scalar_lea.hbm %s4664_s2, 3072  ;;  %s518_s7 = int_to_ptr.vmem [resolvable:$true] %s517_s7 }
  0x90   : > { %p4262_p8 = scmp.ne.s32.totalorder %s4664_s2, %s4261_s27  ;;  %s4266_s15 = scalar_lea.hbm %s5219_s9, 6144 }
  0x91   : > { %p4267_p1 = scmp.lt.s32.totalorder %s4664_s2, %s5219_s9  ;;  %p4268_p3 = scmp.lt.s32.totalorder %s4266_s15, %s4261_s27 }
  0x92   : > { %p4264_p10 = pnand %p4262_p8, %p4532_p4 }
  0x93   : > { %p4269_p5 = por %p4268_p3, %p4267_p1 }
  0x94   : > { %p4265_p0 = pneg %p4264_p10 }
  0x96   : > { %p4270_p6 = pnand %p4269_p5, %p4265_p0 }
  0x98   : > { %4273 = shalt.err (!%p4270_p6)
}
  0x99   : > { %s4274_s19 = scalar_lea.vmem %s518_s7, 3072  ;;  %s4371_s20 = smov [#allocation10]  }
  0x9a   : > { %p4275_p9 = scmp.ne.s32.totalorder %s518_s7, %s4274_s19  ;;  %s4279_s29 = sshll.u32 %s4371_s20, 4  ;;  %s4280_s29 = int_to_ptr.vmem [resolvable:$false] %s4279_s29 }
  0x9b   : > { %s4281_s30 = scalar_lea.vmem %s4280_s29, 6144  ;;  %p4282_p2 = scmp.lt.s32.totalorder %s518_s7, %s4280_s29 }
  0x9c   : > { %p4277_p11 = pnand %p4275_p9, %p4532_p4  ;;  %p4283_p7 = scmp.lt.s32.totalorder %s4281_s30, %s4274_s19 }
  0x9e   : > { %p4278_p12 = pneg %p4277_p11  ;;  %p4284_p8 = por %p4283_p7, %p4282_p2 }
  0xa0   : > { %p4285_p10 = pnand %p4284_p8, %p4278_p12 }
  0xa2   : > { %4288 = shalt.err (!%p4285_p10)
}
  0xa3   : > { %3847 = dma.hbm_to_vmem [thread:$0]  (!%p4498_p13), %s4664_s2, 3072, %s518_s7, %s4569_s3, %s5262_s8, %s5262_s8, %s5263_s12  }
  0xa4   : > { %p5265_p4 = scmp.ne.s32.totalorder %s5257_s18, 0 }
  0xa5   : > { %s4690_s26 = sand.u32 (!%p5265_p4), 1, %s4353_s22   ;;  %p5266_p0 = scmp.ne.s32.totalorder (!%p5265_p4), %s5250_s13, 0 }
  0xa6   : > { %543 = sbr.rel (%p5265_p4) target bundleno = 1390 (0x56e), region = 68  ;;  %s546_s21 = scalar_lea.sflag (!%p5265_p4), [#allocation3], %s4690_s26 }
  0xa7   : > { %s3818_s11 = smul.u32 (!%p5265_p4), 768, %s4690_s26 }
  0xa9   : > { %s4694_s23 = scalar_lea.vmem (!%p5265_p4), [#allocation2], %s3818_s11 }
  0xab   : > { %4332 = dma.done.wait (%p5266_p0), %s546_s21, 12288  }
  0xac   : > { %4334 = vsyncadd (%p5266_p0), %s546_s21, 4294955008  ;;  %s554_s3 = sand.u32 1, %s4462_s25   ;;  %s4702_s17 = smul.u32 192, %s4690_s26 }
  0xad   : > { %s555_s18 = scalar_lea.sflag [#allocation6], %s554_s3 }
  0xae   : > { %s4705_s8 = scalar_lea.vmem [#allocation5], %s4702_s17 }
  0xaf   : > { %4336 = dma.done.wait (%p5266_p0), %s555_s18, 7168  }
  0xb0   : > { %4338 = vsyncadd (%p5266_p0), %s555_s18, 4294960128  ;;  %s3338_s12 = sshll.u32 %s4690_s26, 8  ;;  %s573_s2 = scalar_lea.sflag [#allocation9], %s554_s3 }
  0xb1   : > { %s4712_s10 = scalar_lea.vmem [#allocation7], %s3338_s12  ;;  %s4715_s6 = scalar_lea.vmem [#allocation8], %s4702_s17 }
  0xb2   : > { %4340 = dma.done.wait (%p5266_p0), %s573_s2, 6144  }
  0xb3   : > { %4342 = vsyncadd (%p5266_p0), %s573_s2, 4294961152  ;;  %v3893_v0 = vld [vmem:[%s4694_s23 + $0xac] ss:$12 sps:$4 sm:$0xff]   ;;  %v3897_v2 = vld [vmem:[%s4694_s23 + $0xa8] ss:$12 sps:$4 sm:$0xff]   ;;  %p671_p13 = scmp.lt.s32.totalorder %s4462_s25, 1 }
  0xb4   : > { %v3895_v1 = vld [vmem:[%s4694_s23 + $0x22c] ss:$12 sps:$4 sm:$0xff]   ;;  %1415 = vmatprep.subr.bf16.mxu0 %v3893_v0  ;;  %v3898_v3 = vld [vmem:[%s4694_s23 + $0x228] ss:$12 sps:$4 sm:$0xff]   ;;  %v3903_v6 = vld [vmem:[%s4694_s23 + $0x90] ss:$12 sps:$4 sm:$0xff]  }
  0xb5   : > { %1468 = vmatprep.subr.bf16.mxu1 %v3895_v1  ;;  %v3899_v4 = vld [vmem:[%s4694_s23 + $0x94] ss:$12 sps:$4 sm:$0xff]   ;;  %1416 = vmatpush1.bf16.msra.mxu0 %v3897_v2  ;;  %v3904_v7 = vld [vmem:[%s4694_s23 + $0x210] ss:$12 sps:$4 sm:$0xff]   ;;  %v3909_v10 = vld [vmem:[%s4694_s23 + $0x78] ss:$12 sps:$4 sm:$0xff]  }
  0xb6   : > { %1469 = vmatpush1.bf16.msra.mxu1 %v3898_v3  ;;  %v3901_v5 = vld [vmem:[%s4694_s23 + $0x214] ss:$12 sps:$4 sm:$0xff]   ;;  %1417 = vmatprep.subr.bf16.mxu0 %v3899_v4  ;;  %v3905_v8 = vld [vmem:[%s4694_s23 + $0x7c] ss:$12 sps:$4 sm:$0xff]   ;;  %v3910_v11 = vld [vmem:[%s4694_s23 + $0x1f8] ss:$12 sps:$4 sm:$0xff]  }
  0xb7   : > { %1470 = vmatprep.subr.bf16.mxu1 %v3901_v5  ;;  %v3907_v9 = vld [vmem:[%s4694_s23 + $0x1fc] ss:$12 sps:$4 sm:$0xff]   ;;  %v3911_v12 = vld [vmem:[%s4694_s23 + $0x64] ss:$12 sps:$4 sm:$0xff]   ;;  %v3915_v14 = vld [vmem:[%s4694_s23 + $0x60] ss:$12 sps:$4 sm:$0xff]  }
  0xb8   : > { %v3913_v13 = vld [vmem:[%s4694_s23 + $0x1e4] ss:$12 sps:$4 sm:$0xff]   ;;  %v3916_v15 = vld [vmem:[%s4694_s23 + $0x1e0] ss:$12 sps:$4 sm:$0xff]   ;;  %v3921_v18 = vld [vmem:[%s4694_s23 + $0x48] ss:$12 sps:$4 sm:$0xff]  }
  0xb9   : > { %1418 = vmatpush1.bf16.msra.mxu0 %v3903_v6  ;;  %v3917_v16 = vld [vmem:[%s4694_s23 + $0x4c] ss:$12 sps:$4 sm:$0xff]   ;;  %v3922_v19 = vld [vmem:[%s4694_s23 + $0x1c8] ss:$12 sps:$4 sm:$0xff]   ;;  %v3927_v22 = vld [vmem:[%s4694_s23 + $0x30] ss:$12 sps:$4 sm:$0xff]  }
  0xba   : > { %1471 = vmatpush1.bf16.msra.mxu1 %v3904_v7  ;;  %1419 = vmatprep.subr.bf16.mxu0 %v3905_v8  ;;  %v3919_v17 = vld [vmem:[%s4694_s23 + $0x1cc] ss:$12 sps:$4 sm:$0xff]   ;;  %v3923_v20 = vld [vmem:[%s4694_s23 + $0x34] ss:$12 sps:$4 sm:$0xff]   ;;  %v3928_v23 = vld [vmem:[%s4694_s23 + $0x1b0] ss:$12 sps:$4 sm:$0xff]  }
  0xbb   : > { %1472 = vmatprep.subr.bf16.mxu1 %v3907_v9  ;;  %v3925_v21 = vld [vmem:[%s4694_s23 + $0x1b4] ss:$12 sps:$4 sm:$0xff]   ;;  %v3929_v24 = vld [vmem:[%s4694_s23 + $0x1c] ss:$12 sps:$4 sm:$0xff]   ;;  %v3933_v26 = vld [vmem:[%s4694_s23 + $0x18] ss:$12 sps:$4 sm:$0xff]  }
  0xbc   : > { %v3931_v25 = vld [vmem:[%s4694_s23 + $0x19c] ss:$12 sps:$4 sm:$0xff]   ;;  %v3934_v27 = vld [vmem:[%s4694_s23 + $0x198] ss:$12 sps:$4 sm:$0xff]   ;;  %v3939_v30 = vld [vmem:[%s4694_s23] ss:$12 sps:$4 sm:$0xff]  }
  0xbd   : > { %1420 = vmatpush1.bf16.msra.mxu0 %v3909_v10  ;;  %v3935_v28 = vld [vmem:[%s4694_s23 + $0x4] ss:$12 sps:$4 sm:$0xff]   ;;  %v3940_v31 = vld [vmem:[%s4694_s23 + $0x180] ss:$12 sps:$4 sm:$0xff]   ;;  %v3945_v34 = vld [vmem:[%s4694_s23 + $0x168] ss:$12 sps:$4 sm:$0xff]  }
  0xbe   : > { %1473 = vmatpush1.bf16.msra.mxu1 %v3910_v11  ;;  %1421 = vmatprep.subr.bf16.mxu0 %v3911_v12  ;;  %v3937_v29 = vld [vmem:[%s4694_s23 + $0x184] ss:$12 sps:$4 sm:$0xff]   ;;  %v3941_v32 = vld [vmem:[%s4694_s23 + $0x16c] ss:$12 sps:$4 sm:$0xff]   ;;  %v3946_v35 = vld [vmem:[%s4694_s23 + $0x2e8] ss:$12 sps:$4 sm:$0xff]  }
  0xbf   : > { %1474 = vmatprep.subr.bf16.mxu1 %v3913_v13  ;;  %v3943_v33 = vld [vmem:[%s4694_s23 + $0x2ec] ss:$12 sps:$4 sm:$0xff]   ;;  %v3947_v36 = vld [vmem:[%s4694_s23 + $0x154] ss:$12 sps:$4 sm:$0xff]   ;;  %s4760_s13 = scalar_select %p671_p13, %s4462_s25, 1  ;;  %vm4374_vm9 = vmmov 0  }
  0xc0   : > { %v3949_v37 = vld [vmem:[%s4694_s23 + $0x2d4] ss:$12 sps:$4 sm:$0xff]   ;;  %v3951_v38 = vld [vmem:[%s4694_s23 + $0x150] ss:$12 sps:$4 sm:$0xff]   ;;  %v3957_v42 = vld [vmem:[%s4694_s23 + $0x138] ss:$12 sps:$4 sm:$0xff]  }
  0xc1   : > { %1422 = vmatpush1.bf16.msra.mxu0 %v3915_v14  ;;  %v3952_v39 = vld [vmem:[%s4694_s23 + $0x2d0] ss:$12 sps:$4 sm:$0xff]   ;;  %s3554_s7 = sshll.u32 %s4760_s13, 7  ;;  %v3958_v43 = vld [vmem:[%s4694_s23 + $0x2b8] ss:$12 sps:$4 sm:$0xff]   ;;  %s5267_s28 = sld [smem:[#allocation22_spill]] }
  0xc2   : > { %1475 = vmatpush1.bf16.msra.mxu1 %v3916_v15  ;;  %1423 = vmatprep.subr.bf16.mxu0 %v3917_v16  ;;  %v3953_v40 = vld [vmem:[%s4694_s23 + $0x13c] ss:$12 sps:$4 sm:$0xff]   ;;  %s4775_s16 = scalar_lea.vmem %s5210_s0, %s3554_s7  ;;  %v3959_v44 = vld [vmem:[%s4694_s23 + $0x124] ss:$12 sps:$4 sm:$0xff]   ;;  %v3963_v50 = vld [vmem:[%s4694_s23 + $0x120] ss:$12 sps:$4 sm:$0xff]  }
  0xc3   : > { %1476 = vmatprep.subr.bf16.mxu1 %v3919_v17  ;;  %v3955_v41 = vld [vmem:[%s4694_s23 + $0x2bc] ss:$12 sps:$4 sm:$0xff]   ;;  %v3961_v45 = vld [vmem:[%s4694_s23 + $0x2a4] ss:$12 sps:$4 sm:$0xff]   ;;  %v3964_v51 = vld [vmem:[%s4694_s23 + $0x2a0] ss:$12 sps:$4 sm:$0xff]  }
  0xc4   : > { %v698_v46 = vld [vmem:[%s4775_s16 + $0x8] sm:$0xff]  ;;  %v700_v48 = vld [vmem:[%s4775_s16 + $0x18] sm:$0xff]  ;;  %v3971_v58 = vld [vmem:[%s4694_s23 + $0xf4] ss:$12 sps:$4 sm:$0xff]   ;;  %s5021_s20 = scalar_lea.vmem [#allocation10], %s4702_s17  ;;  %s5268_s11 = sld [smem:[#allocation25_spill]] }
  0xc5   : > { %1424 = vmatpush1.bf16.msra.mxu0 %v3921_v18  ;;  %v702_v47 = vld [vmem:[%s4775_s16 + $0x28] sm:$0xff]  ;;  %v704_v49 = vld [vmem:[%s4775_s16 + $0x38] sm:$0xff]  ;;  %v3973_v59 = vld [vmem:[%s4694_s23 + $0x274] ss:$12 sps:$4 sm:$0xff]   ;;  %s5269_s17 = sld [smem:[#allocation24_spill]]  ;;  %vm2998_vm10 = vcmask 1040384  }
  0xc6   : > { %1477 = vmatpush1.bf16.msra.mxu1 %v3922_v19  ;;  %1425 = vmatprep.subr.bf16.mxu0 %v3923_v20  ;;  %v3965_v52 = vld [vmem:[%s4694_s23 + $0x10c] ss:$12 sps:$4 sm:$0xff]   ;;  %v4786_v53 = vpack.c.bf16 %v702_v47, %v698_v46  ;;  %v4788_v54 = vpack.c.bf16 %v704_v49, %v700_v48  ;;  %v3969_v56 = vld [vmem:[%s4694_s23 + $0x108] ss:$12 sps:$4 sm:$0xff]   ;;  %v3975_v60 = vld [vmem:[%s4694_s23 + $0xf0] ss:$12 sps:$4 sm:$0xff]  }
  0xc7   : > { %1478 = vmatprep.subr.bf16.mxu1 %v3925_v21  ;;  %v3967_v55 = vld [vmem:[%s4694_s23 + $0x28c] ss:$12 sps:$4 sm:$0xff]   ;;  %v3970_v57 = vld [vmem:[%s4694_s23 + $0x288] ss:$12 sps:$4 sm:$0xff]   ;;  %v3976_v61 = vld [vmem:[%s4694_s23 + $0x270] ss:$12 sps:$4 sm:$0xff]   ;;  %s678_s19 = scalar_lea.vmem %s5267_s28, %s4760_s13 }
  0xc8   : > { %1447 = vmatprep.mubr.bf16.mxu0 %v4786_v53  ;;  %1500 = vmatprep.mubr.bf16.mxu1 %v4788_v54  ;;  %v3977_v62 = vld [vmem:[%s4694_s23 + $0xdc] ss:$12 sps:$4 sm:$0xff]   ;;  %v3981_v0 = vld [vmem:[%s4694_s23 + $0xd8] ss:$12 sps:$4 sm:$0xff]   ;;  %v3987_v4 = vld [vmem:[%s4694_s23 + $0xc0] ss:$12 sps:$4 sm:$0xff]  }
  0xc9   : > { %1426 = vmatpush1.bf16.msra.mxu0 %v3927_v22  ;;  %v3979_v63 = vld [vmem:[%s4694_s23 + $0x25c] ss:$12 sps:$4 sm:$0xff]   ;;  %v3982_v1 = vld [vmem:[%s4694_s23 + $0x258] ss:$12 sps:$4 sm:$0xff]   ;;  %v3988_v5 = vld [vmem:[%s4694_s23 + $0x240] ss:$12 sps:$4 sm:$0xff]  }
  0xca   : > { %1479 = vmatpush1.bf16.msra.mxu1 %v3928_v23  ;;  %1427 = vmatprep.subr.bf16.mxu0 %v3929_v24  ;;  %v3983_v2 = vld [vmem:[%s4694_s23 + $0xc4] ss:$12 sps:$4 sm:$0xff]   ;;  %v706_v12 = vld [vmem:[%s4775_s16 + $0x48] sm:$0xff]  ;;  %v708_v16 = vld [vmem:[%s4775_s16 + $0x58] sm:$0xff]  ;;  %s684_s21 = scalar_lea.vmem %s5268_s11, %s4760_s13  ;;  %s5271_s4 = sld [smem:[#allocation29_spill]]  ;;  %vm3086_vm11 = vcmask 9216  }
  0xcb   : > { %1480 = vmatprep.subr.bf16.mxu1 %v3931_v25  ;;  %v3985_v3 = vld [vmem:[%s4694_s23 + $0x244] ss:$12 sps:$4 sm:$0xff]   ;;  %v710_v13 = vld [vmem:[%s4775_s16 + $0x68] sm:$0xff]  ;;  %v712_v19 = vld [vmem:[%s4775_s16 + $0x78] sm:$0xff]  ;;  %s681_s18 = scalar_lea.vmem %s5269_s17, %s4760_s13  ;;  %s5272_s14 = sld [smem:[#allocation28_spill]] }
  0xcc   : > { %v697_v6 = vld [vmem:[%s4775_s16] sm:$0xff]  ;;  %v699_v8 = vld [vmem:[%s4775_s16 + $0x10] sm:$0xff]  ;;  %v4827_v24 = vpack.c.bf16 %v710_v13, %v706_v12  ;;  %v4829_v25 = vpack.c.bf16 %v712_v19, %v708_v16  ;;  %v4052_v19 = vld [vmem:[%s4712_s10 + $0x78] sm:$0xff]  }
  0xcd   : > { %1428 = vmatpush1.bf16.msra.mxu0 %v3933_v26  ;;  %v701_v7 = vld [vmem:[%s4775_s16 + $0x20] sm:$0xff]  ;;  %v703_v9 = vld [vmem:[%s4775_s16 + $0x30] sm:$0xff] }
  0xce   : > { %1481 = vmatpush1.bf16.msra.mxu1 %v3934_v27  ;;  %1429 = vmatprep.subr.bf16.mxu0 %v3935_v28  ;;  %v3989_v10 = vld [vmem:[%s4694_s23 + $0x170] ss:$12 sps:$4 sm:$0xff]   ;;  %v4818_v17 = vpack.c.bf16 %v701_v7, %v697_v6  ;;  %v4820_v18 = vpack.c.bf16 %v703_v9, %v699_v8  ;;  %v3993_v20 = vld [vmem:[%s4694_s23 + $0x158] ss:$12 sps:$4 sm:$0xff]   ;;  %v4013_v48 = vld [vmem:[%s4694_s23 + $0xe0] ss:$12 sps:$4 sm:$0xff]  }
  0xcf   : > { %1482 = vmatprep.subr.bf16.mxu1 %v3937_v29  ;;  %v3990_v11 = vld [vmem:[%s4694_s23 + $0x2f0] ss:$12 sps:$4 sm:$0xff]   ;;  %v3994_v21 = vld [vmem:[%s4694_s23 + $0x2d8] ss:$12 sps:$4 sm:$0xff]   ;;  %v4014_v49 = vld [vmem:[%s4694_s23 + $0x260] ss:$12 sps:$4 sm:$0xff]  }
  0xd0   : > { %v3991_v14 = vld [vmem:[%s4694_s23 + $0xb0] ss:$12 sps:$4 sm:$0xff]   ;;  %v3995_v22 = vld [vmem:[%s4694_s23 + $0x98] ss:$12 sps:$4 sm:$0xff]   ;;  %v4035_v6 = vld [vmem:[%s4705_s8 + $0x48] ss:$12 sps:$4 sm:$0xff]  }
  0xd1   : > { %1430 = vmatpush1.bf16.msra.mxu0 %v3939_v30  ;;  %v3992_v15 = vld [vmem:[%s4694_s23 + $0x230] ss:$12 sps:$4 sm:$0xff]   ;;  %v3996_v23 = vld [vmem:[%s4694_s23 + $0x218] ss:$12 sps:$4 sm:$0xff]   ;;  %v3997_v30 = vld [vmem:[%s4694_s23 + $0x140] ss:$12 sps:$4 sm:$0xff]   ;;  %s690_s28 = scalar_lea.vmem %s5272_s14, %s4760_s13 }
  0xd2   : > { %1483 = vmatpush1.bf16.msra.mxu1 %v3940_v31  ;;  %1431 = vmatprep.subr.bf16.mxu0 %v3941_v32  ;;  %v705_v26 = vld [vmem:[%s4775_s16 + $0x40] sm:$0xff]  ;;  %v707_v28 = vld [vmem:[%s4775_s16 + $0x50] sm:$0xff] }
  0xd3   : > { %1484 = vmatprep.subr.bf16.mxu1 %v3943_v33  ;;  %v709_v27 = vld [vmem:[%s4775_s16 + $0x60] sm:$0xff]  ;;  %v711_v29 = vld [vmem:[%s4775_s16 + $0x70] sm:$0xff]  ;;  %s5128_s16 = scalar_lea.vmem %s5271_s4, %s3554_s7 }
  0xd4   : > { %v3998_v31 = vld [vmem:[%s4694_s23 + $0x2c0] ss:$12 sps:$4 sm:$0xff]   ;;  %v4842_v33 = vpack.c.bf16 %v709_v27, %v705_v26  ;;  %v4011_v46 = vld [vmem:[%s4694_s23 + $0x38] ss:$12 sps:$4 sm:$0xff]   ;;  %v4042_v8 = vld [vmem:[%s4705_s8 + $0x68] ss:$12 sps:$4 sm:$0xff]  }
  0xd5   : > { %1432 = vmatpush2.bf16.msra.mxu0 %v3945_v34  ;;  %v3999_v32 = vld [vmem:[%s4694_s23 + $0x80] ss:$12 sps:$4 sm:$0xff]   ;;  %v4844_v34 = vpack.c.bf16 %v711_v29, %v707_v28  ;;  %v4012_v47 = vld [vmem:[%s4694_s23 + $0x1b8] ss:$12 sps:$4 sm:$0xff]   ;;  %v4039_v9 = vld [vmem:[%s4705_s8 + $0x30] ss:$12 sps:$4 sm:$0xff]  }
  0xd6   : > { %1485 = vmatpush2.bf16.msra.mxu1 %v3946_v35  ;;  %1433 = vmatprep.subr.bf16.mxu0 %v3947_v36  ;;  %v4000_v35 = vld [vmem:[%s4694_s23 + $0x200] ss:$12 sps:$4 sm:$0xff]   ;;  %v4001_v36 = vld [vmem:[%s4694_s23 + $0x128] ss:$12 sps:$4 sm:$0xff]   ;;  %v4043_v12 = vld [vmem:[%s4705_s8 + $0x18] ss:$12 sps:$4 sm:$0xff]  }
  0xd7   : > { %1486 = vmatprep.subr.bf16.mxu1 %v3949_v37  ;;  %v4002_v37 = vld [vmem:[%s4694_s23 + $0x2a8] ss:$12 sps:$4 sm:$0xff]   ;;  %v4049_v13 = vld [vmem:[%s4705_s8 + $0x4] ss:$12 sps:$4 sm:$0xff]   ;;  %v4051_v16 = vld [vmem:[%s4705_s8 + $0x20] ss:$12 sps:$4 sm:$0xff]  }
  0xd8   : > { %v4041_v7 = vld [vmem:[%s4705_s8 + $0x34] ss:$12 sps:$4 sm:$0xff]  }
  0xd9   : > { %1434 = vmatpush2.bf16.msra.mxu0 %v3951_v38  ;;  %v4003_v38 = vld [vmem:[%s4694_s23 + $0x68] ss:$12 sps:$4 sm:$0xff]  }
  0xda   : > { %1487 = vmatpush2.bf16.msra.mxu1 %v3952_v39  ;;  %1435 = vmatprep.subr.bf16.mxu0 %v3953_v40  ;;  %v4004_v39 = vld [vmem:[%s4694_s23 + $0x1e8] ss:$12 sps:$4 sm:$0xff]   ;;  %v4005_v40 = vld [vmem:[%s4694_s23 + $0x110] ss:$12 sps:$4 sm:$0xff]  }
  0xdb   : > { %1488 = vmatprep.subr.bf16.mxu1 %v3955_v41  ;;  %v4006_v41 = vld [vmem:[%s4694_s23 + $0x290] ss:$12 sps:$4 sm:$0xff]  }
  0xdd   : > { %1436 = vmatpush2.bf16.msra.mxu0 %v3957_v42  ;;  %v4007_v42 = vld [vmem:[%s4694_s23 + $0x50] ss:$12 sps:$4 sm:$0xff]  }
  0xde   : > { %1489 = vmatpush2.bf16.msra.mxu1 %v3958_v43  ;;  %1437 = vmatprep.subr.bf16.mxu0 %v3959_v44  ;;  %v4008_v43 = vld [vmem:[%s4694_s23 + $0x1d0] ss:$12 sps:$4 sm:$0xff]   ;;  %v4009_v44 = vld [vmem:[%s4694_s23 + $0xf8] ss:$12 sps:$4 sm:$0xff]  }
  0xdf   : > { %1490 = vmatprep.subr.bf16.mxu1 %v3961_v45  ;;  %v4010_v45 = vld [vmem:[%s4694_s23 + $0x278] ss:$12 sps:$4 sm:$0xff]  }
  0xe1   : > { %1438 = vmatpush2.bf16.msra.mxu0 %v3963_v50  ;;  %v4015_v50 = vld [vmem:[%s4694_s23 + $0x20] ss:$12 sps:$4 sm:$0xff]  }
  0xe2   : > { %1491 = vmatpush2.bf16.msra.mxu1 %v3964_v51  ;;  %1439 = vmatprep.subr.bf16.mxu0 %v3965_v52  ;;  %v4016_v51 = vld [vmem:[%s4694_s23 + $0x1a0] ss:$12 sps:$4 sm:$0xff]   ;;  %v4017_v52 = vld [vmem:[%s4694_s23 + $0xc8] ss:$12 sps:$4 sm:$0xff]  }
  0xe3   : > { %1492 = vmatprep.subr.bf16.mxu1 %v3967_v55  ;;  %v4018_v55 = vld [vmem:[%s4694_s23 + $0x248] ss:$12 sps:$4 sm:$0xff]  }
  0xe5   : > { %1440 = vmatpush2.bf16.msra.mxu0 %v3969_v56  ;;  %v4019_v56 = vld [vmem:[%s4694_s23 + $0x8] ss:$12 sps:$4 sm:$0xff]  }
  0xe6   : > { %1493 = vmatpush2.bf16.msra.mxu1 %v3970_v57  ;;  %1441 = vmatprep.subr.bf16.mxu0 %v3971_v58  ;;  %v4020_v57 = vld [vmem:[%s4694_s23 + $0x188] ss:$12 sps:$4 sm:$0xff]   ;;  %v4023_v58 = vld [vmem:[%s4705_s8 + $0xac] ss:$12 sps:$4 sm:$0xff]   ;;  %s5274_s23 = sld [smem:[#allocation30_spill]] }
  0xe7   : > { %1494 = vmatprep.subr.bf16.mxu1 %v3973_v59  ;;  %v4021_v59 = vld [vmem:[%s4705_s8 + $0xa8] ss:$12 sps:$4 sm:$0xff]  }
  0xe9   : > { %1442 = vmatpush2.bf16.msra.mxu0 %v3975_v60  ;;  %v4024_v60 = vld [vmem:[%s4705_s8 + $0x90] ss:$12 sps:$4 sm:$0xff]  }
  0xea   : > { %1495 = vmatpush2.bf16.msra.mxu1 %v3976_v61  ;;  %1443 = vmatprep.subr.bf16.mxu0 %v3977_v62  ;;  %v4026_v61 = vld [vmem:[%s4705_s8 + $0x94] ss:$12 sps:$4 sm:$0xff]   ;;  %v4029_v62 = vld [vmem:[%s4705_s8 + $0x7c] ss:$12 sps:$4 sm:$0xff]  }
  0xeb   : > { %1496 = vmatprep.subr.bf16.mxu1 %v3979_v63  ;;  %v4030_v63 = vld [vmem:[%s4705_s8 + $0xb0] ss:$12 sps:$4 sm:$0xff]  }
  0xec   : > { %s5275_s3 = smov %s5274_s23 }
  0xed   : > { %1444 = vmatpush2.bf16.msra.mxu0 %v3981_v0  ;;  %v4034_v0 = vld [vmem:[%s4705_s8 + $0x98] ss:$12 sps:$4 sm:$0xff]  }
  0xee   : > { %1497 = vmatpush2.bf16.msra.mxu1 %v3982_v1  ;;  %1445 = vmatprep.subr.bf16.mxu0 %v3983_v2  ;;  %v4027_v1 = vld [vmem:[%s4705_s8 + $0x78] ss:$12 sps:$4 sm:$0xff]  }
  0xef   : > { %1498 = vmatprep.subr.bf16.mxu1 %v3985_v3  ;;  %v4033_v2 = vld [vmem:[%s4705_s8 + $0x64] ss:$12 sps:$4 sm:$0xff]   ;;  %v4031_v3 = vld [vmem:[%s4705_s8 + $0x60] ss:$12 sps:$4 sm:$0xff]  }
  0xf1   : > { %1446 = vmatpush2.bf16.msra.mxu0 %v3987_v4  ;;  %v4037_v4 = vld [vmem:[%s4705_s8 + $0x4c] ss:$12 sps:$4 sm:$0xff]  }
  0xf2   : > { %1499 = vmatpush2.bf16.msra.mxu1 %v3988_v5  ;;  %3556 = vmatprep.subr.bf16.mxu0 %v3989_v10  ;;  %v4038_v5 = vld [vmem:[%s4705_s8 + $0x80] ss:$12 sps:$4 sm:$0xff]   ;;  %v4045_v10 = vld [vmem:[%s4705_s8 + $0x1c] ss:$12 sps:$4 sm:$0xff]  }
  0xf3   : > { %3584 = vmatprep.subr.bf16.mxu1 %v3990_v11  ;;  %v4046_v11 = vld [vmem:[%s4705_s8 + $0x50] ss:$12 sps:$4 sm:$0xff]  }
  0xf4   : > { %1448 = vmatmul.mubr.bf16.vlgmr.msra.gmra.mxu0 %v4818_v17 }
  0xf5   : > { %1501 = vmatmul.mubr.bf16.vlgmr.msra.gmra.mxu1 %v4820_v18  ;;  %3557 = vmatpush3.bf16.msra.mxu0 %v3991_v14  ;;  %v4050_v14 = vld [vmem:[%s4705_s8 + $0x38] ss:$12 sps:$4 sm:$0xff]  }
  0xf6   : > { %3585 = vmatpush3.bf16.msra.mxu1 %v3992_v15  ;;  %3558 = vmatprep.subr.bf16.mxu0 %v3993_v20  ;;  %v4047_v15 = vld [vmem:[%s4705_s8] ss:$12 sps:$4 sm:$0xff]   ;;  %v4372_v20 = vmov 0  }
  0xf7   : > { %3586 = vmatprep.subr.bf16.mxu1 %v3994_v21  ;;  %1457 = vmatprep.mubr.bf16.mxu0 %v4827_v24  ;;  %v4054_v21 = vld [vmem:[%s4705_s8 + $0x8] ss:$12 sps:$4 sm:$0xff]  }
  0xf8   : > { %1510 = vmatprep.mubr.bf16.mxu1 %v4829_v25 }
  0xf9   : > { %3559 = vmatpush3.bf16.msra.mxu0 %v3995_v22  ;;  %v4058_v22 = vld [vmem:[%s4712_s10 + $0xf8] sm:$0xff]  }
  0xfa   : > { %3587 = vmatpush3.bf16.msra.mxu1 %v3996_v23  ;;  %3560 = vmatprep.subr.bf16.mxu0 %v3997_v30 }
  0xfb   : > { %3588 = vmatprep.subr.bf16.mxu1 %v3998_v31 }
  0xfc   : > { %1458 = vmatmul.mubr.bf16.gmra.mxu0 %v4842_v33 }
  0xfd   : > { %1511 = vmatmul.mubr.bf16.gmra.mxu1 %v4844_v34  ;;  %3561 = vmatpush3.bf16.msra.mxu0 %v3999_v32 }
  0xfe   : > { %3589 = vmatpush3.bf16.msra.mxu1 %v4000_v35  ;;  %3562 = vmatprep.subr.bf16.mxu0 %v4001_v36 }
  0xff   : > { %3590 = vmatprep.subr.bf16.mxu1 %v4002_v37  ;;  %1553 = vmatprep.mubr.bf16.mxu0 %v4786_v53 }
 0x100   : > { %1602 = vmatprep.mubr.bf16.mxu1 %v4788_v54 }
 0x101   : > { %3563 = vmatpush3.bf16.msra.mxu0 %v4003_v38 }
 0x102   : > { %3591 = vmatpush3.bf16.msra.mxu1 %v4004_v39  ;;  %3564 = vmatprep.subr.bf16.mxu0 %v4005_v40 }
 0x103   : > { %3592 = vmatprep.subr.bf16.mxu1 %v4006_v41 }
 0x105   : > { %3565 = vmatpush3.bf16.msra.mxu0 %v4007_v42 }
 0x106   : > { %3593 = vmatpush3.bf16.msra.mxu1 %v4008_v43  ;;  %3566 = vmatprep.subr.bf16.mxu0 %v4009_v44  ;;  %v713_v43 = vlaneseq }
 0x107   : > { %3594 = vmatprep.subr.bf16.mxu1 %v4010_v45 }
 0x109   : > { %3567 = vmatpush3.bf16.msra.mxu0 %v4011_v46 }
 0x10a   : > { %3595 = vmatpush3.bf16.msra.mxu1 %v4012_v47  ;;  %3568 = vmatprep.subr.bf16.mxu0 %v4013_v48  ;;  %v4908_v48 = vshrl.u32 %v713_v43, 7 }
 0x10b   : > { %3596 = vmatprep.subr.bf16.mxu1 %v4014_v49 }
 0x10c   : > { %vm1648_vm0 = vcmp.lt.s32.totalorder %v4908_v48, 1  ;;  %vm1623_vm2 = vcmp.lt.s32.totalorder %v4908_v48, 2  ;;  %vm2640_vm6 = vcmp.lt.s32.totalorder %v4908_v48, 4 }
 0x10d   : > { %3569 = vmatpush3.bf16.msra.mxu0 %v4015_v50 }
 0x10e   : > { %3597 = vmatpush3.bf16.msra.mxu1 %v4016_v51  ;;  %3570 = vmatprep.subr.bf16.mxu0 %v4017_v52  ;;  %v4912_v51 = vand.u32 15, %v4908_v48 }
 0x10f   : > { %3598 = vmatprep.subr.bf16.mxu1 %v4018_v55 }
 0x110   : > { %vm1653_vm1 = vcmp.ge.s32.totalorder %v4912_v51, 1  ;;  %vm1628_vm3 = vcmp.ge.s32.totalorder %v4912_v51, 2  ;;  %vm2645_vm8 = vcmp.ge.s32.totalorder %v4912_v51, 4  ;;  %v4373_v51 = vmov 0.0  }
 0x111   : > { %3571 = vmatpush3.bf16.msra.mxu0 %v4019_v56 }
 0x112   : > { %3599 = vmatpush3.bf16.msra.mxu1 %v4020_v57  ;;  %1854 = vmatprep.subr.bf16.mxu0 %v4023_v58 }
 0x113   : > { %3715 = vmatprep.subr.bf16.mxu1 %v4030_v63 }
 0x114   : > { %1554 = vmatmul.mubr.bf16.vlgmr.msra.gmra.mxu0 %v4818_v17 }
 0x115   : > { %1603 = vmatmul.mubr.bf16.vlgmr.msra.gmra.mxu1 %v4820_v18  ;;  %1561 = vmatprep.mubr.bf16.mxu0 %v4827_v24 }
 0x116   : > { %1610 = vmatprep.mubr.bf16.mxu1 %v4829_v25  ;;  %1855 = vmatpush1.bf16.msra.mxu0 %v4021_v59 }
 0x117   : > { %1856 = vmatprep.subr.bf16.mxu0 %v4026_v61  ;;  %3716 = vmatpush3.bf16.msra.mxu1 %v4030_v63 }
 0x118   : > { %3717 = vmatprep.subr.bf16.mxu1 %v4034_v0 }
 0x11a   : > { %1857 = vmatpush1.bf16.msra.mxu0 %v4024_v60  ;;  %v716_v60 = vadd.s32 16, %v4908_v48 }
 0x11b   : > { %1858 = vmatprep.subr.bf16.mxu0 %v4029_v62  ;;  %3718 = vmatpush3.bf16.msra.mxu1 %v4034_v0 }
 0x11c   : > { %1562 = vmatmul.mubr.bf16.gmra.mxu0 %v4842_v33  ;;  %3719 = vmatprep.subr.bf16.mxu1 %v4038_v5 }
 0x11d   : > { %1611 = vmatmul.mubr.bf16.gmra.mxu1 %v4844_v34  ;;  %1886 = vmatprep.mubr.bf16.mxu0 %v4372_v20 }
 0x11e   : > { %1859 = vmatpush1.bf16.msra.mxu0 %v4027_v1 }
 0x11f   : > { %1860 = vmatprep.subr.bf16.mxu0 %v4033_v2  ;;  %3720 = vmatpush3.bf16.msra.mxu1 %v4038_v5 }
 0x120   : > { %3721 = vmatprep.subr.bf16.mxu1 %v4042_v8 }
 0x122   : > { %1861 = vmatpush1.bf16.msra.mxu0 %v4031_v3 }
 0x123   : > { %1862 = vmatprep.subr.bf16.mxu0 %v4037_v4  ;;  %3722 = vmatpush3.bf16.msra.mxu1 %v4042_v8 }
 0x124   : > { %3723 = vmatprep.subr.bf16.mxu1 %v4046_v11 }
 0x126   : > { %1863 = vmatpush1.bf16.msra.mxu0 %v4035_v6 }
 0x127   : > { %1864 = vmatprep.subr.bf16.mxu0 %v4041_v7  ;;  %3724 = vmatpush3.bf16.msra.mxu1 %v4046_v11 }
 0x128   : > { %3725 = vmatprep.subr.bf16.mxu1 %v4050_v14 }
 0x12a   : > { %1865 = vmatpush1.bf16.msra.mxu0 %v4039_v9  ;;  %v4928_v9 = vand.u32 15, %v716_v60 }
 0x12b   : > { %1866 = vmatprep.subr.bf16.mxu0 %v4045_v10  ;;  %3726 = vmatpush3.bf16.msra.mxu1 %v4050_v14 }
 0x12c   : > { %3727 = vmatprep.subr.bf16.mxu1 %v4051_v16  ;;  %vm1655_vm4 = vcmp.ge.s32.totalorder %v4928_v9, 1  ;;  %vm1630_vm5 = vcmp.ge.s32.totalorder %v4928_v9, 2  ;;  %vm2647_vm7 = vcmp.ge.s32.totalorder %v4928_v9, 4 }
 0x12e   : > { %1867 = vmatpush1.bf16.msra.mxu0 %v4043_v12 }
 0x12f   : > { %1868 = vmatprep.subr.bf16.mxu0 %v4049_v13  ;;  %3728 = vmatpush3.bf16.msra.mxu1 %v4051_v16 }
 0x130   : > { %3729 = vmatprep.subr.bf16.mxu1 %v4054_v21 }
 0x132   : > { %1869 = vmatpush1.bf16.msra.mxu0 %v4047_v15 }
 0x133   : > { %3622 = vmatprep.subr.bf16.mxu0 %v4052_v19  ;;  %3730 = vmatpush3.bf16.msra.mxu1 %v4054_v21 }
 0x134   : > { %3650 = vmatprep.subr.bf16.mxu1 %v4058_v22 }
 0x1b4   : > { %v1449_v23 = vpop.f32.mrf.mxu0 }
 0x1b5   : > { %v1502_v26 = vpop.f32.mrf.mxu1 }
 0x1b6   : > { %v1451_v27 = vpop.f32.mrf.mxu0  ;;  %v1503_v47 = vadd.f32 %v1502_v26, %v1449_v23  ;;  %v3440_v23 = vld [vmem:[%s678_s19] ss:$0 sm:$0xff]  ;;  %s3339_s19 = sshll.u32 %s4690_s26, 1 }
 0x1b7   : > { %v1504_v28 = vpop.f32.mrf.mxu1  ;;  %s670_s29 = scalar_lea.vmem [#allocation11], %s3339_s19 }
 0x1b8   : > { %v1453_v29 = vpop.f32.mrf.mxu0  ;;  %v1505_v45 = vadd.f32 %v1504_v28, %v1451_v27  ;;  %v1619_v56 = vrot.slane %v1503_v47, 6  ;;  %s3102_s30 = sshll.u32 %s670_s29, 4  ;;  %s5169_s30 = int_to_ptr.vmem [resolvable:$true] %s3102_s30 }
 0x1b9   : > { %v1506_v30 = vpop.f32.mrf.mxu1  ;;  %s4289_s8 = scalar_lea.vmem %s5169_s30, 32 }
 0x1ba   : > { %v1455_v31 = vpop.f32.mrf.mxu0  ;;  %v1644_v50 = vrot.slane %v1505_v45, 7  ;;  %v1507_v59 = vadd.f32 %v1506_v30, %v1453_v29  ;;  %p4290_p1 = scmp.ne.s32.totalorder %s5169_s30, %s4289_s8 }
 0x1bb   : > { %v1508_v32 = vpop.f32.mrf.mxu1 }
 0x1bc   : > { %v1459_v35 = vpop.f32.mrf.mxu0  ;;  %v1509_v55 = vadd.f32 %v1508_v32, %v1455_v31  ;;  %v1620_v8 = vrot.slane %v1507_v59, 6 }
 0x1bd   : > { %v1512_v36 = vpop.f32.mrf.mxu1 }
 0x1be   : > { %v1461_v37 = vpop.f32.mrf.mxu0  ;;  %v1513_v63 = vadd.f32 %v1512_v36, %v1459_v35  ;;  %v1645_v1 = vrot.slane %v1509_v55, 7  ;;  %v1626_v29 = vsel %vm1623_vm2, %v1619_v56, %v1620_v8 }
 0x1bf   : > { %v1514_v38 = vpop.f32.mrf.mxu1 }
 0x1c0   : > { %v1463_v39 = vpop.f32.mrf.mxu0  ;;  %v1515_v57 = vadd.f32 %v1514_v38, %v1461_v37  ;;  %v1621_v13 = vrot.slane %v1513_v63, 6  ;;  %v1651_v16 = vsel %vm1648_vm0, %v1644_v50, %v1645_v1 }
 0x1c1   : > { %v1516_v40 = vpop.f32.mrf.mxu1  ;;  %v1670_v36 = vadd.f32 %v1651_v16, %v1626_v29  ;;  %v4062_v16 = vld [vmem:[%s4712_s10 + $0xf0] sm:$0xff]   ;;  %v4070_v29 = vld [vmem:[%s4712_s10 + $0xe0] sm:$0xff]  }
 0x1c2   : > { %v1465_v41 = vpop.f32.mrf.mxu0  ;;  %v4906_v46 = vadd.f32 %v1516_v40, %v1463_v39  ;;  %v1646_v5 = vrot.slane %v1515_v57, 7  ;;  %v1625_v32 = vsel %vm1623_vm2, %v1620_v8, %v1621_v13 }
 0x1c3   : > { %v1518_v42 = vpop.f32.mrf.mxu1  ;;  %v1642_v45 = vsel %vm1630_vm5, %v1625_v32, 0.0  ;;  %v4075_v32 = vld [vmem:[%s4712_s10 + $0x8] sm:$0xff]  }
 0x1c4   : > { %v4904_v44 = vadd.f32 %v1518_v42, %v1465_v41  ;;  %v1622_v52 = vrot.slane %v4906_v46, 6  ;;  %v1650_v22 = vsel %vm1648_vm0, %v1645_v1, %v1646_v5 }
 0x1c5   : > { %v1667_v37 = vsel %vm1655_vm4, %v1650_v22, 0.0  ;;  %v4065_v22 = vld [vmem:[%s4712_s10 + $0x58] sm:$0xff]  }
 0x1c6   : > { %v1647_v49 = vrot.slane %v4904_v44, 7  ;;  %v1627_v0 = vsel %vm1623_vm2, %v1622_v52, %v1619_v56  ;;  %v1671_v56 = vadd.f32 %v1667_v37, %v1642_v45  ;;  %v1624_v57 = vsel %vm1623_vm2, %v1621_v13, %v1622_v52  ;;  %v4055_v52 = vld [vmem:[%s4712_s10 + $0x70] sm:$0xff]   ;;  %v4060_v13 = vld [vmem:[%s4712_s10 + $0xb8] sm:$0xff]  }
 0x1c7   : > { %v1640_v10 = vsel %vm1628_vm3, %v1627_v0, 0.0  ;;  %v4078_v37 = vld [vmem:[%s4712_s10 + $0xd0] sm:$0xff]   ;;  %v4087_v45 = vld [vmem:[%s4715_s6 + $0xac] ss:$12 sps:$4 sm:$0xff]  }
 0x1c8   : > { %v1652_v58 = vsel %vm1648_vm0, %v1647_v49, %v1644_v50 }
 0x1c9   : > { %v1665_v2 = vsel %vm1653_vm1, %v1652_v58, 0.0  ;;  %v1649_v58 = vsel %vm1648_vm0, %v1646_v5, %v1647_v49  ;;  %v4056_v5 = vld [vmem:[%s4712_s10 + $0x30] sm:$0xff]  }
 0x1ca   : > { %v1669_v15 = vadd.f32 %v1665_v2, %v1640_v10  ;;  %v4053_v2 = vld [vmem:[%s4712_s10 + $0x38] sm:$0xff]  }
 0x1d4   : > { %v3572_v61 = vpop.f32.mrf.mxu0 }
 0x1d5   : > { %v3600_v62 = vpop.f32.mrf.mxu1 }
 0x1d6   : > { %v3573_v3 = vpop.f32.mrf.mxu0 }
 0x1d7   : > { %v3601_v4 = vpop.f32.mrf.mxu1  ;;  %v3574_v6 = vadd.f32 %v3573_v3, %v3572_v61 }
 0x1d8   : > { %v3602_v7 = vadd.f32 %v3601_v4, %v3600_v62  ;;  %v3575_v11 = vpop.f32.mrf.mxu0 }
 0x1d9   : > { %v3603_v12 = vpop.f32.mrf.mxu1 }
 0x1da   : > { %v1605_v14 = vadd.f32 %v3602_v7, %v3574_v6  ;;  %v3576_v19 = vpop.f32.mrf.mxu0  ;;  %v1672_v6 = vadd.f32 %v1649_v58, %v1624_v57  ;;  %v4057_v7 = vld [vmem:[%s4712_s10 + $0x68] sm:$0xff]   ;;  %v4105_v58 = vld [vmem:[%s4715_s6 + $0x34] ss:$12 sps:$4 sm:$0xff]  }
 0x1db   : > { %v3604_v21 = vpop.f32.mrf.mxu1  ;;  %v3577_v27 = vadd.f32 %v3576_v19, %v3575_v11  ;;  %v4063_v19 = vld [vmem:[%s4712_s10 + $0x20] sm:$0xff]   ;;  %v4099_v57 = vld [vmem:[%s4715_s6 + $0x48] ss:$12 sps:$4 sm:$0xff]  }
 0x1dc   : > { %v1673_v26 = vadd.f32 %v1669_v15, %v1605_v14  ;;  %v3605_v28 = vadd.f32 %v3604_v21, %v3603_v12  ;;  %v3578_v30 = vpop.f32.mrf.mxu0  ;;  %v4059_v12 = vld [vmem:[%s4712_s10 + $0x28] sm:$0xff]   ;;  %v4061_v15 = vld [vmem:[%s4712_s10 + $0x60] sm:$0xff]   ;;  %v4064_v21 = vld [vmem:[%s4712_s10 + $0xb0] sm:$0xff]  }
 0x1dd   : > { %v3606_v31 = vpop.f32.mrf.mxu1 }
 0x1de   : > { %v1608_v35 = vadd.f32 %v3605_v28, %v3577_v27  ;;  %v1683_v38 = vadd.f32 %v3440_v23, %v1673_v26  ;;  %v3579_v39 = vpop.f32.mrf.mxu0  ;;  %v4067_v26 = vld [vmem:[%s4712_s10 + $0x18] sm:$0xff]   ;;  %v4068_v27 = vld [vmem:[%s4712_s10 + $0xa8] sm:$0xff]   ;;  %v4069_v28 = vld [vmem:[%s4712_s10 + $0x50] sm:$0xff]  }
 0x1df   : > { %v3607_v40 = vpop.f32.mrf.mxu1  ;;  %v3580_v42 = vadd.f32 %v3579_v39, %v3578_v30  ;;  %v4071_v30 = vld [vmem:[%s4712_s10 + $0x10] sm:$0xff]  }
 0x1e0   : > { %v1674_v41 = vadd.f32 %v1670_v36, %v1608_v35  ;;  %v3608_v43 = vadd.f32 %v3607_v40, %v3606_v31  ;;  %v3581_v46 = vpop.f32.mrf.mxu0  ;;  %v1687_v59 = vmax.f32 %v1683_v38, 0.0  ;;  %v4074_v31 = vld [vmem:[%s4712_s10 + $0xd8] sm:$0xff]   ;;  %v4077_v36 = vld [vmem:[%s4712_s10 + $0x40] sm:$0xff]   ;;  %v4080_v39 = vld [vmem:[%s4712_s10 + $0x90] sm:$0xff]  }
 0x1e1   : > { %v3609_v47 = vpop.f32.mrf.mxu1  ;;  %v4076_v35 = vld [vmem:[%s4712_s10 + $0x98] sm:$0xff]   ;;  %v4079_v38 = vld [vmem:[%s4712_s10] sm:$0xff]   ;;  %v4081_v40 = vld [vmem:[%s4712_s10 + $0xc8] sm:$0xff]  }
 0x1e2   : > { %v1684_v50 = vadd.f32 %v3440_v23, %v1674_v41  ;;  %v1613_v55 = vadd.f32 %v3608_v43, %v3580_v42  ;;  %v3582_v60 = vpop.f32.mrf.mxu0  ;;  %v4082_v41 = vld [vmem:[%s4712_s10 + $0x88] sm:$0xff]   ;;  %v4083_v42 = vld [vmem:[%s4712_s10 + $0xc0] sm:$0xff]  }
 0x1e3   : > { %v3610_v61 = vpop.f32.mrf.mxu1  ;;  %v3583_v0 = vadd.f32 %v3582_v60, %v3581_v46  ;;  %v4084_v43 = vld [vmem:[%s4712_s10 + $0x80] sm:$0xff]   ;;  %v4088_v46 = vld [vmem:[%s4715_s6 + $0x90] ss:$12 sps:$4 sm:$0xff]  }
 0x1e4   : > { %v1688_v62 = vmax.f32 %v1684_v50, 0.0  ;;  %v1675_v63 = vadd.f32 %v1671_v56, %v1613_v55  ;;  %v3611_v1 = vadd.f32 %v3610_v61, %v3609_v47  ;;  %v4098_v47 = vld [vmem:[%s4715_s6 + $0x98] ss:$12 sps:$4 sm:$0xff]   ;;  %v4095_v50 = vld [vmem:[%s4715_s6 + $0x60] ss:$12 sps:$4 sm:$0xff]  }
 0x1e5   : > { %v4101_v55 = vld [vmem:[%s4715_s6 + $0x4c] ss:$12 sps:$4 sm:$0xff]   ;;  %v4103_v60 = vld [vmem:[%s4715_s6 + $0x30] ss:$12 sps:$4 sm:$0xff]  }
 0x1e6   : > { %v1724_v3 = vpack.c.bf16 %v1688_v62, %v1687_v59  ;;  %v1616_v4 = vadd.f32 %v3611_v1, %v3583_v0  ;;  %v1685_v49 = vadd.f32 %v3440_v23, %v1675_v63  ;;  %v4102_v56 = vld [vmem:[%s4715_s6 + $0x80] ss:$12 sps:$4 sm:$0xff]   ;;  %v4106_v59 = vld [vmem:[%s4715_s6 + $0x68] ss:$12 sps:$4 sm:$0xff]   ;;  %v4110_v62 = vld [vmem:[%s4715_s6 + $0x50] ss:$12 sps:$4 sm:$0xff]  }
 0x1e7   : > { %v4109_v61 = vld [vmem:[%s4715_s6 + $0x1c] ss:$12 sps:$4 sm:$0xff]   ;;  %v4107_v63 = vld [vmem:[%s4715_s6 + $0x18] ss:$12 sps:$4 sm:$0xff]  }
 0x1e8   : > { %v1676_v44 = vadd.f32 %v1672_v6, %v1616_v4  ;;  %1887 = vmatmul.mubr.bf16.vlgmr.msra.gmra.mxu0 %v1724_v3  ;;  %3731 = vmatprep.mubr.bf16.mxu1 %v1724_v3  ;;  %v1689_v10 = vmax.f32 %v1685_v49, 0.0  ;;  %v4113_v0 = vld [vmem:[%s4715_s6 + $0x4] ss:$12 sps:$4 sm:$0xff]   ;;  %v4115_v3 = vld [vmem:[%s4715_s6 + $0x20] ss:$12 sps:$4 sm:$0xff]  }
 0x1e9   : > { %3623 = vmatpush3.bf16.msra.mxu0 %v4053_v2  ;;  %1896 = vmatprep.mubr.bf16.mxu0 %v4372_v20  ;;  %v4114_v1 = vld [vmem:[%s4715_s6 + $0x38] ss:$12 sps:$4 sm:$0xff]   ;;  %v4111_v2 = vld [vmem:[%s4715_s6] ss:$12 sps:$4 sm:$0xff]   ;;  %v4116_v4 = vld [vmem:[%s4715_s6 + $0x8] ss:$12 sps:$4 sm:$0xff]  }
 0x1ea   : > { %3624 = vmatprep.subr.bf16.mxu0 %v4055_v52  ;;  %v1686_v8 = vadd.f32 %v3440_v23, %v1676_v44  ;;  %v4066_v23 = vld [vmem:[%s4712_s10 + $0xe8] sm:$0xff]   ;;  %v5025_v52 = vld [vmem:[%s5021_s20 + $0xb0] ss:$12 sps:$4 sm:$0xff]  }
 0x1eb   : > { %v4119_v6 = vld [vmem:[%s5021_s20 + $0xac] ss:$12 sps:$4 sm:$0xff]  }
 0x1ec   : > { %v1690_v11 = vmax.f32 %v1686_v8, 0.0 }
 0x1ed   : > { %3625 = vmatpush3.bf16.msra.mxu0 %v4056_v5 }
 0x1ee   : > { %3626 = vmatprep.subr.bf16.mxu0 %v4057_v7  ;;  %v1725_v14 = vpack.c.bf16 %v1690_v11, %v1689_v10 }
 0x1f0   : > { %1897 = vmatmul.mubr.bf16.gmra.mxu0 %v1725_v14  ;;  %3732 = vmatmul.mubr.bf16.vlgmr.msra.gmra.mxu1 %v1725_v14 }
 0x1f1   : > { %3627 = vmatpush3.bf16.msra.mxu0 %v4059_v12  ;;  %3651 = vmatpush3.bf16.msra.mxu1 %v4060_v13 }
 0x1f2   : > { %3628 = vmatprep.subr.bf16.mxu0 %v4061_v15  ;;  %3652 = vmatprep.subr.bf16.mxu1 %v4062_v16 }
 0x1f3   : > { %2297 = vmatprep.mubr.bf16.mxu0 %v4786_v53  ;;  %2346 = vmatprep.mubr.bf16.mxu1 %v4788_v54  ;;  %v4072_v53 = vld [vmem:[%s4712_s10 + $0xa0] sm:$0xff]   ;;  %v4073_v54 = vld [vmem:[%s4712_s10 + $0x48] sm:$0xff]   ;;  %s5270_s10 = sld [smem:[#allocation27_spill]] }
 0x1f5   : > { %3629 = vmatpush3.bf16.msra.mxu0 %v4063_v19  ;;  %3653 = vmatpush3.bf16.msra.mxu1 %v4064_v21 }
 0x1f6   : > { %3630 = vmatprep.subr.bf16.mxu0 %v4065_v22  ;;  %3654 = vmatprep.subr.bf16.mxu1 %v4066_v23 }
 0x1f9   : > { %3631 = vmatpush3.bf16.msra.mxu0 %v4067_v26  ;;  %3655 = vmatpush3.bf16.msra.mxu1 %v4068_v27  ;;  %s687_s2 = scalar_lea.vmem %s5270_s10, %s4760_s13  ;;  %s5273_s13 = sld [smem:[#allocation20_spill]] }
 0x1fa   : > { %3632 = vmatprep.subr.bf16.mxu0 %v4069_v28  ;;  %3656 = vmatprep.subr.bf16.mxu1 %v4070_v29 }
 0x1fd   : > { %3633 = vmatpush3.bf16.msra.mxu0 %v4071_v30  ;;  %3657 = vmatpush3.bf16.msra.mxu1 %v4072_v53 }
 0x1fe   : > { %3634 = vmatprep.subr.bf16.mxu0 %v4073_v54  ;;  %3658 = vmatprep.subr.bf16.mxu1 %v4074_v31 }
 0x1ff   : > { %p5276_p3 = scmp.ne.s32.totalorder %s5273_s13, 0 }
 0x201   : > { %3635 = vmatpush3.bf16.msra.mxu0 %v4075_v32  ;;  %3659 = vmatpush3.bf16.msra.mxu1 %v4076_v35  ;;  %p4291_p5 = pnand %p4290_p1, %p5276_p3 }
 0x202   : > { %3636 = vmatprep.subr.bf16.mxu0 %v4077_v36  ;;  %3660 = vmatprep.subr.bf16.mxu1 %v4078_v37 }
 0x203   : > { %p4292_p6 = pneg %p4291_p5 }
 0x205   : > { %3637 = vmatpush3.bf16.msra.mxu0 %v4079_v38  ;;  %3661 = vmatpush3.bf16.msra.mxu1 %v4080_v39 }
 0x206   : > { %3662 = vmatprep.subr.bf16.mxu1 %v4081_v40  ;;  %2534 = vmatprep.subr.bf16.mxu0 %v4087_v45 }
 0x208   : > { %2298 = vmatmul.mubr.bf16.vlgmr.msra.gmra.mxu0 %v4818_v17  ;;  %v4085_v17 = vld [vmem:[%s4715_s6 + $0xa8] ss:$12 sps:$4 sm:$0xff]  }
 0x209   : > { %3663 = vmatpush3.bf16.msra.mxu1 %v4082_v41  ;;  %2305 = vmatprep.mubr.bf16.mxu0 %v4827_v24  ;;  %v4090_v24 = vld [vmem:[%s4715_s6 + $0x94] ss:$12 sps:$4 sm:$0xff]  }
 0x20a   : > { %3664 = vmatprep.subr.bf16.mxu1 %v4083_v42  ;;  %2535 = vmatpush1.bf16.msra.mxu0 %v4085_v17 }
 0x20b   : > { %2536 = vmatprep.subr.bf16.mxu0 %v4090_v24 }
 0x20d   : > { %3665 = vmatpush3.bf16.msra.mxu1 %v4084_v43 }
 0x20e   : > { %2537 = vmatpush1.bf16.msra.mxu0 %v4088_v46  ;;  %v3466_v46 = vld [vmem:[%s684_s21] ss:$0 sm:$0xff] }
 0x210   : > { %2306 = vmatmul.mubr.bf16.gmra.mxu0 %v4842_v33  ;;  %2347 = vmatmul.mubr.bf16.vlgmr.msra.gmra.mxu1 %v4820_v18  ;;  %v4093_v18 = vld [vmem:[%s4715_s6 + $0x7c] ss:$12 sps:$4 sm:$0xff]   ;;  %v4091_v33 = vld [vmem:[%s4715_s6 + $0x78] ss:$12 sps:$4 sm:$0xff]  }
 0x211   : > { %2354 = vmatprep.mubr.bf16.mxu1 %v4829_v25  ;;  %2566 = vmatprep.mubr.bf16.mxu0 %v4372_v20  ;;  %v4094_v25 = vld [vmem:[%s4715_s6 + $0xb0] ss:$12 sps:$4 sm:$0xff]  }
 0x212   : > { %2538 = vmatprep.subr.bf16.mxu0 %v4093_v18  ;;  %3735 = vmatprep.subr.bf16.mxu1 %v4094_v25 }
 0x213   : > { %2539 = vmatpush1.bf16.msra.mxu0 %v4091_v33  ;;  %3736 = vmatpush3.bf16.msra.mxu1 %v4094_v25 }
 0x214   : > { %3737 = vmatprep.subr.bf16.mxu1 %v4098_v47 }
 0x217   : > { %3738 = vmatpush3.bf16.msra.mxu1 %v4098_v47 }
 0x218   : > { %2355 = vmatmul.mubr.bf16.gmra.mxu1 %v4844_v34  ;;  %v4097_v34 = vld [vmem:[%s4715_s6 + $0x64] ss:$12 sps:$4 sm:$0xff]   ;;  %3739 = vmatprep.subr.bf16.mxu1 %v4102_v56 }
 0x219   : > { %2540 = vmatprep.subr.bf16.mxu0 %v4097_v34 }
 0x21a   : > { %2541 = vmatpush1.bf16.msra.mxu0 %v4095_v50 }
 0x21b   : > { %2542 = vmatprep.subr.bf16.mxu0 %v4101_v55  ;;  %3740 = vmatpush3.bf16.msra.mxu1 %v4102_v56  ;;  %v3465_v55 = vld [vmem:[%s681_s18] ss:$0 sm:$0xff]  ;;  %s3089_s18 = scalar_lea.sflag [#allocation4], %s4690_s26 }
 0x21c   : > { %3741 = vmatprep.subr.bf16.mxu1 %v4106_v59 }
 0x21e   : > { %2543 = vmatpush1.bf16.msra.mxu0 %v4099_v57 }
 0x21f   : > { %2544 = vmatprep.subr.bf16.mxu0 %v4105_v58  ;;  %3742 = vmatpush3.bf16.msra.mxu1 %v4106_v59 }
 0x220   : > { %3743 = vmatprep.subr.bf16.mxu1 %v4110_v62 }
 0x222   : > { %2545 = vmatpush1.bf16.msra.mxu0 %v4103_v60 }
 0x223   : > { %2546 = vmatprep.subr.bf16.mxu0 %v4109_v61  ;;  %3744 = vmatpush3.bf16.msra.mxu1 %v4110_v62 }
 0x224   : > { %3745 = vmatprep.subr.bf16.mxu1 %v4114_v1 }
 0x226   : > { %2547 = vmatpush1.bf16.msra.mxu0 %v4107_v63 }
 0x227   : > { %2548 = vmatprep.subr.bf16.mxu0 %v4113_v0  ;;  %3746 = vmatpush3.bf16.msra.mxu1 %v4114_v1 }
 0x228   : > { %3747 = vmatprep.subr.bf16.mxu1 %v4115_v3 }
 0x22a   : > { %2549 = vmatpush1.bf16.msra.mxu0 %v4111_v2 }
 0x22b   : > { %3748 = vmatpush3.bf16.msra.mxu1 %v4115_v3  ;;  %2858 = vmatprep.subr.bf16.mxu0 %v4119_v6 }
 0x22c   : > { %3749 = vmatprep.subr.bf16.mxu1 %v4116_v4 }
 0x22f   : > { %3750 = vmatpush3.bf16.msra.mxu1 %v4116_v4 }
 0x230   : > { %3755 = vmatprep.subr.bf16.mxu1 %v5025_v52 }
 0x2a8   : > { %v1888_v44 = vpop.f32.mrf.mxu0 }
 0x2a9   : > { %v1956_v19 = vrot.slane %v1888_v44, 6 }
 0x2aa   : > { %v1890_v49 = vpop.f32.mrf.mxu0 }
 0x2ab   : > { %v1968_v15 = vrot.slane %v1890_v49, 7 }
 0x2ac   : > { %v1892_v5 = vpop.f32.mrf.mxu0 }
 0x2ad   : > { %v1957_v30 = vrot.slane %v1892_v5, 6 }
 0x2ae   : > { %v1894_v7 = vpop.f32.mrf.mxu0 }
 0x2af   : > { %v1969_v26 = vrot.slane %v1894_v7, 7  ;;  %v1962_v41 = vsel %vm1623_vm2, %v1956_v19, %v1957_v30 }
 0x2b0   : > { %v1898_v8 = vpop.f32.mrf.mxu0  ;;  %v3733_v14 = vpop.f32.mrf.mxu1 }
 0x2b1   : > { %v1958_v53 = vrot.slane %v1898_v8, 6  ;;  %v1974_v37 = vsel %vm1648_vm0, %v1968_v15, %v1969_v26 }
 0x2b2   : > { %v1900_v10 = vpop.f32.mrf.mxu0  ;;  %v1941_v22 = vpop.f32.mrf.mxu1  ;;  %v1981_v17 = vadd.f32 %v1974_v37, %v1962_v41 }
 0x2b3   : > { %v1970_v27 = vrot.slane %v1900_v10, 7  ;;  %v1961_v39 = vsel %vm1623_vm2, %v1957_v30, %v1958_v53 }
 0x2b4   : > { %v1902_v11 = vpop.f32.mrf.mxu0  ;;  %v3734_v31 = vpop.f32.mrf.mxu1  ;;  %v1966_v33 = vsel %vm1630_vm5, %v1961_v39, 0.0 }
 0x2b5   : > { %v1959_v16 = vrot.slane %v1902_v11, 6  ;;  %v1973_v36 = vsel %vm1648_vm0, %v1969_v26, %v1970_v27 }
 0x2b6   : > { %v1904_v12 = vpop.f32.mrf.mxu0  ;;  %v1944_v40 = vpop.f32.mrf.mxu1  ;;  %v1978_v43 = vsel %vm1655_vm4, %v1973_v36, 0.0 }
 0x2b7   : > { %v1971_v13 = vrot.slane %v1904_v12, 7  ;;  %v1963_v23 = vsel %vm1623_vm2, %v1959_v16, %v1956_v19  ;;  %v1985_v34 = vadd.f32 %v1981_v17, %v1944_v40  ;;  %v1982_v47 = vadd.f32 %v1978_v43, %v1966_v33  ;;  %v4123_v17 = vld [vmem:[%s5021_s20 + $0x94] ss:$12 sps:$4 sm:$0xff]  }
 0x2b8   : > { %v1964_v54 = vsel %vm1628_vm3, %v1963_v23, 0.0  ;;  %v1960_v62 = vsel %vm1623_vm2, %v1958_v53, %v1959_v16  ;;  %v4129_v33 = vld [vmem:[%s5021_s20 + $0x60] ss:$12 sps:$4 sm:$0xff]  }
 0x2b9   : > { %v1975_v21 = vsel %vm1648_vm0, %v1971_v13, %v1968_v15  ;;  %v1972_v50 = vsel %vm1648_vm0, %v1970_v27, %v1971_v13  ;;  %v1995_v2 = vadd.f32 %v3465_v55, %v1985_v34  ;;  %v1986_v6 = vadd.f32 %v3733_v14, %v1982_v47  ;;  %v4132_v34 = vld [vmem:[%s5021_s20 + $0x68] ss:$12 sps:$4 sm:$0xff]   ;;  %v4135_v47 = vld [vmem:[%s5021_s20 + $0x4c] ss:$12 sps:$4 sm:$0xff]  }
 0x2ba   : > { %v1976_v28 = vsel %vm1653_vm1, %v1975_v21, 0.0  ;;  %v1983_v1 = vadd.f32 %v1972_v50, %v1960_v62  ;;  %v4133_v50 = vld [vmem:[%s5021_s20 + $0x48] ss:$12 sps:$4 sm:$0xff]   ;;  %v4147_v62 = vld [vmem:[%s5021_s20 + $0x4] ss:$12 sps:$4 sm:$0xff]  }
 0x2bb   : > { %v1980_v35 = vadd.f32 %v1976_v28, %v1964_v54  ;;  %v1999_v12 = vmax.f32 %v1995_v2, 0.0  ;;  %v1996_v19 = vadd.f32 %v3465_v55, %v1986_v6  ;;  %v4117_v54 = vld [vmem:[%s5021_s20 + $0xa8] ss:$12 sps:$4 sm:$0xff]  }
 0x2bc   : > { %v1987_v11 = vadd.f32 %v3734_v31, %v1983_v1 }
 0x2bd   : > { %v1984_v24 = vadd.f32 %v1980_v35, %v1941_v22  ;;  %v2000_v35 = vmax.f32 %v1996_v19, 0.0 }
 0x2be   : > { %v1997_v30 = vadd.f32 %v3465_v55, %v1987_v11 }
 0x2bf   : > { %v1994_v60 = vadd.f32 %v3465_v55, %v1984_v24  ;;  %v4124_v24 = vld [vmem:[%s5021_s20 + $0x98] ss:$12 sps:$4 sm:$0xff]   ;;  %v4136_v55 = vld [vmem:[%s5021_s20 + $0x50] ss:$12 sps:$4 sm:$0xff]  }
 0x2c1   : > { %v1998_v5 = vmax.f32 %v1994_v60, 0.0  ;;  %v4141_v60 = vld [vmem:[%s5021_s20 + $0x18] ss:$12 sps:$4 sm:$0xff]  }
 0x2c8   : > { %v3638_v29 = vpop.f32.mrf.mxu0 }
 0x2ca   : > { %v3639_v32 = vpop.f32.mrf.mxu0 }
 0x2cb   : > { %v3640_v45 = vadd.f32 %v3639_v32, %v3638_v29 }
 0x2cc   : > { %v3641_v38 = vpop.f32.mrf.mxu0 }
 0x2cd   : > { %v2300_v58 = vadd.f32 %v3640_v45, %v3466_v46  ;;  %v4121_v45 = vld [vmem:[%s5021_s20 + $0x90] ss:$12 sps:$4 sm:$0xff]  }
 0x2ce   : > { %v3642_v42 = vpop.f32.mrf.mxu0 }
 0x2cf   : > { %v3643_v59 = vadd.f32 %v3642_v42, %v3641_v38  ;;  %v2001_v38 = vmax.f32 %v1997_v30, 0.0 }
 0x2d0   : > { %v3644_v18 = vpop.f32.mrf.mxu0  ;;  %v3666_v25 = vpop.f32.mrf.mxu1 }
 0x2d1   : > { %v2303_v44 = vadd.f32 %v3643_v59, %v3466_v46  ;;  %v4143_v59 = vld [vmem:[%s5021_s20 + $0x1c] ss:$12 sps:$4 sm:$0xff]  }
 0x2d2   : > { %v3645_v56 = vpop.f32.mrf.mxu0  ;;  %v3667_v57 = vpop.f32.mrf.mxu1 }
 0x2d3   : > { %v3668_v61 = vadd.f32 %v3667_v57, %v3666_v25  ;;  %v3646_v49 = vadd.f32 %v3645_v56, %v3644_v18  ;;  %v4125_v18 = vld [vmem:[%s5021_s20 + $0x78] ss:$12 sps:$4 sm:$0xff]   ;;  %v4128_v25 = vld [vmem:[%s5021_s20 + $0x80] ss:$12 sps:$4 sm:$0xff]   ;;  %v4137_v57 = vld [vmem:[%s5021_s20 + $0x30] ss:$12 sps:$4 sm:$0xff]  }
 0x2d4   : > { %v3647_v63 = vpop.f32.mrf.mxu0  ;;  %v3669_v0 = vpop.f32.mrf.mxu1  ;;  %v4139_v56 = vld [vmem:[%s5021_s20 + $0x34] ss:$12 sps:$4 sm:$0xff]  }
 0x2d5   : > { %v2349_v3 = vadd.f32 %v3668_v61, %v2300_v58  ;;  %v2308_v21 = vadd.f32 %v3646_v49, %v3466_v46  ;;  %v4140_v58 = vld [vmem:[%s5021_s20 + $0x38] ss:$12 sps:$4 sm:$0xff]   ;;  %v4144_v61 = vld [vmem:[%s5021_s20 + $0x20] ss:$12 sps:$4 sm:$0xff]  }
 0x2d6   : > { %v3670_v4 = vpop.f32.mrf.mxu1  ;;  %v3648_v8 = vpop.f32.mrf.mxu0 }
 0x2d7   : > { %v3671_v7 = vadd.f32 %v3670_v4, %v3669_v0  ;;  %v2363_v13 = vadd.f32 %v2349_v3, %v1998_v5  ;;  %v3649_v22 = vadd.f32 %v3648_v8, %v3647_v63  ;;  %v4145_v63 = vld [vmem:[%s5021_s20] ss:$12 sps:$4 sm:$0xff]   ;;  %v4148_v0 = vld [vmem:[%s5021_s20 + $0x8] ss:$12 sps:$4 sm:$0xff]  }
 0x2d8   : > { %v3672_v10 = vpop.f32.mrf.mxu1 }
 0x2d9   : > { %v2352_v15 = vadd.f32 %v3671_v7, %v2303_v44  ;;  %v2367_v14 = vmax.f32 %v2363_v13, 0.0  ;;  %v2311_v31 = vadd.f32 %v3649_v22, %v3466_v46  ;;  %v4127_v46 = vld [vmem:[%s5021_s20 + $0x7c] ss:$12 sps:$4 sm:$0xff]  }
 0x2da   : > { %v3673_v16 = vpop.f32.mrf.mxu1 }
 0x2db   : > { %v5060_v23 = vadd.f32 %v2352_v15, %v1999_v12  ;;  %v3674_v26 = vadd.f32 %v3673_v16, %v3672_v10 }
 0x2dc   : > { %v3675_v27 = vpop.f32.mrf.mxu1 }
 0x2dd   : > { %v2368_v28 = vmax.f32 %v5060_v23, 0.0  ;;  %v2357_v29 = vadd.f32 %v3674_v26, %v2308_v21 }
 0x2de   : > { %v3676_v53 = vpop.f32.mrf.mxu1 }
 0x2df   : > { %v2404_v32 = vpack.c.bf16 %v2368_v28, %v2367_v14  ;;  %v3677_v36 = vadd.f32 %v3676_v53, %v3675_v27  ;;  %v2365_v37 = vadd.f32 %v2357_v29, %v2000_v35 }
 0x2e1   : > { %v2360_v39 = vadd.f32 %v3677_v36, %v2311_v31  ;;  %2567 = vmatmul.mubr.bf16.vlgmr.msra.gmra.mxu0 %v2404_v32  ;;  %3751 = vmatprep.mubr.bf16.mxu1 %v2404_v32  ;;  %v2369_v41 = vmax.f32 %v2365_v37, 0.0 }
 0x2e2   : > { %2576 = vmatprep.mubr.bf16.mxu0 %v4372_v20  ;;  %2859 = vmatpush1.bf16.msra.mxu0 %v4117_v54 }
 0x2e3   : > { %v5067_v40 = vadd.f32 %v2360_v39, %v2001_v38  ;;  %2860 = vmatprep.subr.bf16.mxu0 %v4123_v17 }
 0x2e5   : > { %v2370_v42 = vmax.f32 %v5067_v40, 0.0 }
 0x2e6   : > { %2861 = vmatpush1.bf16.msra.mxu0 %v4121_v45  ;;  %v3523_v45 = vld [vmem:[%s687_s2] ss:$0 sm:$0xff] }
 0x2e7   : > { %v2405_v43 = vpack.c.bf16 %v2370_v42, %v2369_v41  ;;  %2862 = vmatprep.subr.bf16.mxu0 %v4127_v46 }
 0x2e9   : > { %2577 = vmatmul.mubr.bf16.gmra.mxu0 %v2405_v43  ;;  %3752 = vmatmul.mubr.bf16.vlgmr.msra.gmra.mxu1 %v2405_v43 }
 0x2ea   : > { %3756 = vmatpush3.bf16.msra.mxu1 %v5025_v52  ;;  %2890 = vmatprep.mubr.bf16.mxu0 %v4372_v20  ;;  %v4131_v52 = vld [vmem:[%s5021_s20 + $0x64] ss:$12 sps:$4 sm:$0xff]   ;;  %s3550_s20 = sshll.u32 %s4462_s25, 5  ;;  %s4375_s25 = smov [#allocation11]  }
 0x2eb   : > { %3757 = vmatprep.subr.bf16.mxu1 %v4124_v24  ;;  %2863 = vmatpush1.bf16.msra.mxu0 %v4125_v18  ;;  %s5167_s17 = scalar_lea.hbm %s5274_s23, %s3550_s20  ;;  %s4293_s12 = sshll.u32 %s4375_s25, 4  ;;  %s4294_s12 = int_to_ptr.vmem [resolvable:$false] %s4293_s12 }
 0x2ec   : > { %2864 = vmatprep.subr.bf16.mxu0 %v4131_v52  ;;  %s4295_s10 = scalar_lea.vmem %s4294_s12, 64  ;;  %p4296_p9 = scmp.lt.s32.totalorder %s5169_s30, %s4294_s12 }
 0x2ed   : > { %p4297_p11 = scmp.lt.s32.totalorder %s4295_s10, %s4289_s8 }
 0x2ee   : > { %3758 = vmatpush3.bf16.msra.mxu1 %v4124_v24 }
 0x2ef   : > { %3759 = vmatprep.subr.bf16.mxu1 %v4128_v25  ;;  %2865 = vmatpush1.bf16.msra.mxu0 %v4129_v33  ;;  %p4298_p12 = por %p4297_p11, %p4296_p9 }
 0x2f0   : > { %2866 = vmatprep.subr.bf16.mxu0 %v4135_v47 }
 0x2f1   : > { %p4299_p2 = pnand %p4298_p12, %p4292_p6 }
 0x2f2   : > { %3760 = vmatpush3.bf16.msra.mxu1 %v4128_v25 }
 0x2f3   : > { %3761 = vmatprep.subr.bf16.mxu1 %v4132_v34  ;;  %2867 = vmatpush1.bf16.msra.mxu0 %v4133_v50 }
 0x2f4   : > { %2868 = vmatprep.subr.bf16.mxu0 %v4139_v56 }
 0x2f6   : > { %3762 = vmatpush3.bf16.msra.mxu1 %v4132_v34 }
 0x2f7   : > { %3763 = vmatprep.subr.bf16.mxu1 %v4136_v55  ;;  %2869 = vmatpush1.bf16.msra.mxu0 %v4137_v57 }
 0x2f8   : > { %2870 = vmatprep.subr.bf16.mxu0 %v4143_v59  ;;  %v3015_v59 = vld [vmem:[%s5128_s16 + $0x78] sm:$0xff] }
 0x2fa   : > { %3764 = vmatpush3.bf16.msra.mxu1 %v4136_v55 }
 0x2fb   : > { %3765 = vmatprep.subr.bf16.mxu1 %v4140_v58  ;;  %2871 = vmatpush1.bf16.msra.mxu0 %v4141_v60  ;;  %v3013_v60 = vld [vmem:[%s5128_s16 + $0x68] sm:$0xff] }
 0x2fc   : > { %2872 = vmatprep.subr.bf16.mxu0 %v4147_v62  ;;  %v3011_v62 = vld [vmem:[%s5128_s16 + $0x58] sm:$0xff] }
 0x2fe   : > { %3766 = vmatpush3.bf16.msra.mxu1 %v4140_v58 }
 0x2ff   : > { %3767 = vmatprep.subr.bf16.mxu1 %v4144_v61  ;;  %2873 = vmatpush1.bf16.msra.mxu0 %v4145_v63  ;;  %v3010_v63 = vld [vmem:[%s5128_s16 + $0x50] sm:$0xff] }
 0x300   : > { %3775 = vmatprep.subr.mxu0 %v4373_v51 }
 0x302   : > { %3768 = vmatpush3.bf16.msra.mxu1 %v4144_v61  ;;  %v3012_v61 = vld [vmem:[%s5128_s16 + $0x60] sm:$0xff] }
 0x303   : > { %3769 = vmatprep.subr.bf16.mxu1 %v4148_v0 }
 0x306   : > { %3770 = vmatpush3.bf16.msra.mxu1 %v4148_v0  ;;  %v3009_v0 = vld [vmem:[%s5128_s16 + $0x48] sm:$0xff] }
 0x3a1   : > { %v2568_v1 = vpop.f32.mrf.mxu0 }
 0x3a2   : > { %v2636_v15 = vrot.slane %v2568_v1, 4  ;;  %v3008_v1 = vld [vmem:[%s5128_s16 + $0x40] sm:$0xff] }
 0x3a3   : > { %v2570_v2 = vpop.f32.mrf.mxu0 }
 0x3a4   : > { %v2661_v8 = vrot.slane %v2570_v2, 6  ;;  %v3007_v2 = vld [vmem:[%s5128_s16 + $0x38] sm:$0xff] }
 0x3a5   : > { %v2572_v3 = vpop.f32.mrf.mxu0 }
 0x3a6   : > { %v2637_v5 = vrot.slane %v2572_v3, 4  ;;  %v3006_v3 = vld [vmem:[%s5128_s16 + $0x30] sm:$0xff] }
 0x3a7   : > { %v2574_v4 = vpop.f32.mrf.mxu0 }
 0x3a8   : > { %v2662_v6 = vrot.slane %v2574_v4, 6  ;;  %v2643_v53 = vsel %vm2640_vm6, %v2636_v15, %v2637_v5  ;;  %v3005_v4 = vld [vmem:[%s5128_s16 + $0x28] sm:$0xff] }
 0x3a9   : > { %v2578_v44 = vpop.f32.mrf.mxu0  ;;  %v3753_v49 = vpop.f32.mrf.mxu1 }
 0x3aa   : > { %v2638_v7 = vrot.slane %v2578_v44, 4  ;;  %v2667_v21 = vsel %vm1623_vm2, %v2661_v8, %v2662_v6  ;;  %v3003_v44 = vld [vmem:[%s5128_s16 + $0x18] sm:$0xff] }
 0x3ab   : > { %v2580_v10 = vpop.f32.mrf.mxu0  ;;  %v2621_v11 = vpop.f32.mrf.mxu1  ;;  %v2674_v35 = vadd.f32 %v2667_v21, %v2643_v53 }
 0x3ac   : > { %v2642_v12 = vsel %vm2640_vm6, %v2637_v5, %v2638_v7  ;;  %v2663_v13 = vrot.slane %v2580_v10, 6  ;;  %v3001_v5 = vld [vmem:[%s5128_s16 + $0x8] sm:$0xff] }
 0x3ad   : > { %v2582_v19 = vpop.f32.mrf.mxu0  ;;  %v3754_v16 = vpop.f32.mrf.mxu1  ;;  %v2659_v27 = vsel %vm2647_vm7, %v2642_v12, 0.0 }
 0x3ae   : > { %v2666_v22 = vsel %vm1623_vm2, %v2662_v6, %v2663_v13  ;;  %v2639_v26 = vrot.slane %v2582_v19, 4  ;;  %v3004_v6 = vld [vmem:[%s5128_s16 + $0x20] sm:$0xff] }
 0x3af   : > { %v2671_v14 = vsel %vm1630_vm5, %v2666_v22, 0.0  ;;  %v2584_v29 = vpop.f32.mrf.mxu0  ;;  %v2624_v30 = vpop.f32.mrf.mxu1 }
 0x3b0   : > { %v2675_v54 = vadd.f32 %v2671_v14, %v2659_v27  ;;  %v2644_v31 = vsel %vm2640_vm6, %v2639_v26, %v2636_v15  ;;  %v2664_v32 = vrot.slane %v2584_v29, 6  ;;  %v2641_v9 = vsel %vm2640_vm6, %v2638_v7, %v2639_v26  ;;  %v3000_v7 = vld [vmem:[%s5128_s16] sm:$0xff] }
 0x3b1   : > { %v2678_v38 = vadd.f32 %v2674_v35, %v2624_v30  ;;  %v2657_v41 = vsel %vm2645_vm8, %v2644_v31, 0.0 }
 0x3b2   : > { %v2665_v36 = vsel %vm1623_vm2, %v2663_v13, %v2664_v32  ;;  %v2668_v37 = vsel %vm1623_vm2, %v2664_v32, %v2661_v8  ;;  %v2679_v39 = vadd.f32 %v3753_v49, %v2675_v54  ;;  %v3002_v49 = vld [vmem:[%s5128_s16 + $0x10] sm:$0xff]  ;;  %v3548_v54 = vld [vmem:[%s690_s28] ss:$0 sm:$0xff] }
 0x3b3   : > { %v2669_v43 = vsel %vm1628_vm3, %v2668_v37, 0.0  ;;  %v2676_v17 = vadd.f32 %v2665_v36, %v2641_v9  ;;  %v2688_v25 = vadd.f32 %v3523_v45, %v2678_v38 }
 0x3b4   : > { %v2673_v24 = vadd.f32 %v2669_v43, %v2657_v41  ;;  %v2689_v52 = vadd.f32 %v3523_v45, %v2679_v39 }
 0x3b5   : > { %v2680_v46 = vadd.f32 %v3754_v16, %v2676_v17  ;;  %v2692_v55 = vmax.f32 %v2688_v25, 0.0 }
 0x3b6   : > { %v2677_v18 = vadd.f32 %v2673_v24, %v2621_v11  ;;  %v2693_v56 = vmax.f32 %v2689_v52, 0.0 }
 0x3b7   : > { %v2690_v33 = vadd.f32 %v3523_v45, %v2680_v46 }
 0x3b8   : > { %v2687_v34 = vadd.f32 %v3523_v45, %v2677_v18 }
 0x3b9   : > { %v2694_v47 = vmax.f32 %v2690_v33, 0.0 }
 0x3ba   : > { %v2691_v50 = vmax.f32 %v2687_v34, 0.0 }
 0x3bb   : > { %v2729_v58 = vpack.c.bf16 %v2694_v47, %v2693_v56 }
 0x3bc   : > { %v2728_v57 = vpack.c.bf16 %v2692_v55, %v2691_v50 }
 0x3be   : > { %2891 = vmatmul.mubr.bf16.vlgmr.msra.gmra.mxu0 %v2728_v57  ;;  %3771 = vmatprep.mubr.bf16.mxu1 %v2728_v57 }
 0x3bf   : > { %3772 = vmatmul.mubr.bf16.vlgmr.msra.gmra.mxu1 %v2729_v58  ;;  %2900 = vmatprep.mubr.bf16.mxu0 %v4372_v20  ;;  %v3014_v20 = vld [vmem:[%s5128_s16 + $0x70] sm:$0xff] }
 0x3c0   : > { %3776 = vmatpush3.msra.mxu0 %v3015_v59 }
 0x3c1   : > { %3777 = vmatprep.subr.mxu0 %v4373_v51 }
 0x3c2   : > { %3778 = vmatpush3.msra.mxu0 %v3014_v20 }
 0x3c3   : > { %3779 = vmatprep.subr.mxu0 %v4373_v51 }
 0x3c4   : > { %3780 = vmatpush3.msra.mxu0 %v3013_v60 }
 0x3c5   : > { %3781 = vmatprep.subr.mxu0 %v4373_v51 }
 0x3c6   : > { %2901 = vmatmul.mubr.bf16.gmra.mxu0 %v2729_v58 }
 0x3c7   : > { %3782 = vmatpush3.msra.mxu0 %v3012_v61  ;;  %3807 = vmatprep.mubr.msk.f32.mxu0 %vm4374_vm9, %v4373_v51 }
 0x3c8   : > { %3783 = vmatprep.subr.mxu0 %v4373_v51 }
 0x3c9   : > { %3784 = vmatpush3.msra.mxu0 %v3011_v62 }
 0x3ca   : > { %3785 = vmatprep.subr.mxu0 %v4373_v51 }
 0x3cb   : > { %3786 = vmatpush3.msra.mxu0 %v3010_v63 }
 0x3cc   : > { %3787 = vmatprep.subr.mxu0 %v4373_v51 }
 0x3cd   : > { %3788 = vmatpush3.msra.mxu0 %v3009_v0 }
 0x3ce   : > { %3789 = vmatprep.subr.mxu0 %v4373_v51 }
 0x3cf   : > { %3790 = vmatpush3.msra.mxu0 %v3008_v1 }
 0x3d0   : > { %3791 = vmatprep.subr.mxu0 %v4373_v51 }
 0x3d1   : > { %3792 = vmatpush3.msra.mxu0 %v3007_v2 }
 0x3d2   : > { %3793 = vmatprep.subr.mxu0 %v4373_v51 }
 0x3d3   : > { %3794 = vmatpush3.msra.mxu0 %v3006_v3 }
 0x3d4   : > { %3795 = vmatprep.subr.mxu0 %v4373_v51 }
 0x3d5   : > { %3796 = vmatpush3.msra.mxu0 %v3005_v4 }
 0x3d6   : > { %3797 = vmatprep.subr.mxu0 %v4373_v51 }
 0x3d7   : > { %3798 = vmatpush3.msra.mxu0 %v3004_v6 }
 0x3d8   : > { %3799 = vmatprep.subr.mxu0 %v4373_v51 }
 0x3d9   : > { %3800 = vmatpush3.msra.mxu0 %v3003_v44 }
 0x3da   : > { %3801 = vmatprep.subr.mxu0 %v4373_v51 }
 0x3db   : > { %3802 = vmatpush3.msra.mxu0 %v3002_v49 }
 0x3dc   : > { %3803 = vmatprep.subr.mxu0 %v4373_v51 }
 0x3dd   : > { %3804 = vmatpush3.msra.mxu0 %v3001_v5 }
 0x3de   : > { %3805 = vmatprep.subr.mxu0 %v4373_v51 }
 0x3df   : > { %3806 = vmatpush3.msra.mxu0 %v3000_v7 }
 0x47e   : > { %v2892_v8 = vpop.f32.mrf.mxu0 }
 0x47f   : > { %v3773_v10 = vpop.f32.mrf.mxu1  ;;  %v2958_v16 = vrot.slane %v2892_v8, 4 }
 0x480   : > { %v2894_v11 = vpop.f32.mrf.mxu0 }
 0x481   : > { %v2945_v12 = vpop.f32.mrf.mxu1  ;;  %v2966_v21 = vrot.slane %v2894_v11, 6 }
 0x482   : > { %v2896_v13 = vpop.f32.mrf.mxu0 }
 0x483   : > { %v2959_v15 = vrot.slane %v2896_v13, 4  ;;  %v3774_v22 = vpop.f32.mrf.mxu1 }
 0x484   : > { %v2898_v19 = vpop.f32.mrf.mxu0 }
 0x485   : > { %v2967_v26 = vrot.slane %v2898_v19, 6  ;;  %v2963_v14 = vsel %vm2640_vm6, %v2958_v16, %v2959_v15  ;;  %v2947_v31 = vpop.f32.mrf.mxu1 }
 0x486   : > { %v2902_v27 = vpop.f32.mrf.mxu0 }
 0x487   : > { %v2971_v29 = vsel %vm1623_vm2, %v2966_v21, %v2967_v26  ;;  %v2960_v38 = vrot.slane %v2902_v27, 4 }
 0x488   : > { %v2974_v30 = vadd.f32 %v2971_v29, %v2963_v14  ;;  %v2904_v53 = vpop.f32.mrf.mxu0 }
 0x489   : > { %v2968_v39 = vrot.slane %v2904_v53, 6 }
 0x48a   : > { %v2976_v32 = vadd.f32 %v2974_v30, %v2947_v31  ;;  %v2906_v35 = vpop.f32.mrf.mxu0 }
 0x48b   : > { %v2961_v9 = vrot.slane %v2906_v35, 4 }
 0x48c   : > { %v2984_v36 = vadd.f32 %v3548_v54, %v2976_v32  ;;  %v2908_v37 = vpop.f32.mrf.mxu0 }
 0x48d   : > { %v2969_v41 = vrot.slane %v2908_v37, 6  ;;  %v2962_v43 = vsel %vm2640_vm6, %v2960_v38, %v2961_v9 }
 0x48e   : > { %v2986_v45 = vmax.f32 %v2984_v36, 0.0 }
 0x48f   : > { %v2970_v17 = vsel %vm1623_vm2, %v2968_v39, %v2969_v41 }
 0x490   : > { %v2975_v24 = vadd.f32 %v2970_v17, %v2962_v43  ;;  %v2988_v18 = vadd.f32 %v2986_v45, %v2368_v28 }
 0x492   : > { %v2977_v46 = vadd.f32 %v3774_v22, %v2975_v24  ;;  %v2990_v33 = vmax.f32 %v2988_v18, 0.0 }
 0x494   : > { %v2985_v25 = vadd.f32 %v3548_v54, %v2977_v46  ;;  %v2993_v50 = vrot.slane %v2990_v33, 7 }
 0x496   : > { %v2987_v52 = vmax.f32 %v2985_v25, 0.0 }
 0x498   : > { %v2989_v34 = vadd.f32 %v2987_v52, %v2370_v42 }
 0x49a   : > { %v2991_v47 = vmax.f32 %v2989_v34, 0.0 }
 0x49c   : > { %v2996_v48 = vrot.slane %v2991_v47, 6 }
 0x49e   : > { %v2999_v55 = vsel %vm2998_vm10, %v2993_v50, %v2996_v48 }
 0x49f   : > { %3808 = vmatmul.mubr.f32.vlgmr.msra.gmra.mxu0 %v2999_v55 }
 0x55f   : > { %v3082_v23 = vpop.f32.mrf.mxu0 }
 0x560   : > { %3087 = vst.msk [vmem:[%s670_s29] sm:$0x3] %vm3086_vm11, %v3082_v23 }
 0x561   : > { %v3809_v28 = vpop.f32.mrf.mxu0 }
 0x562   : > { %4302 = shalt.err (!%p4299_p2)
}
 0x563   : > { %s4303_s2 = scalar_lea.hbm %s5167_s17, 32  ;;  %s4307_s27 = scalar_lea.hbm %s5275_s3, 64 }
 0x564   : > { %p4304_p7 = scmp.ne.s32.totalorder %s5167_s17, %s4303_s2  ;;  %p4308_p4 = scmp.lt.s32.totalorder %s5167_s17, %s5275_s3 }
 0x565   : > { %p4309_p0 = scmp.lt.s32.totalorder %s4307_s27, %s4303_s2 }
 0x566   : > { %p4305_p8 = pnand %p4304_p7, %p5276_p3 }
 0x567   : > { %p4310_p13 = por %p4309_p0, %p4308_p4 }
 0x568   : > { %p4306_p10 = pneg %p4305_p8 }
 0x56a   : > { %p4311_p1 = pnand %p4310_p13, %p4306_p10 }
 0x56c   : > { %4314 = shalt.err (!%p4311_p1)
}
 0x56d   : > { %3830 = dma.vmem_to_hbm [thread:$0]  (%p5276_p3), %s5169_s30, 32, %s5167_s17, %s3089_s18  }
 0x56e PF: > { %s5277_s7 = sld [smem:[#allocation16_spill]]  ;;  %p5280_p6 = scmp.ge.s32.totalorder %s4361_s24, 2 }
 0x56f   : > { %s5278_s15 = sld [smem:[#allocation21_spill]] }
 0x574   : > { %s3114_s14 = sand.u32 1, %s5277_s7  }
 0x575   : > { %p5279_p5 = scmp.ne.s32.totalorder %s5278_s15, 0  ;;  %s3115_s28 = scalar_lea.sflag [#allocation4], %s3114_s14 }
 0x577   : > { %p3849_p9 = pnand %p5280_p6, %p5279_p5 }
 0x579   : > { %p3850_p11 = pneg %p3849_p9 }
 0x57b   : > { %4344 = dma.done.wait (%p3850_p11), %s3115_s28, 32  }
 0x57c   : > { %4346 = vsyncadd (%p3850_p11), %s3115_s28, 4294967264  ;;  %s5281_s24 = sld [smem:[#allocation18_spill]]  ;;  %s5284_s21 = smov %s4353_s22 }
 0x57d   : > { %s5282_s19 = sld [smem:[#allocation17_spill]] }
 0x57e   : > { %s5283_s23 = sld [smem:[#allocation19_spill]] }
 0x582   : > { %p31_p12 = scmp.ge.s32.totalorder %s5281_s24, 4  }
 0x583   : > { %s5285_s22 = smov %s5282_s19 }
 0x584   :  { %33 = sbr.rel (!%p31_p12) target bundleno = 19 (0x13), region = 182 }
 0x589   :  { %3120 = vsyncpa [#allocation3], 1 }
 0x58a   :  { %3122 = vsyncpa [#allocation3 + $0x1], 1 }
 0x58b   :  { %3123 = vsyncpa [#allocation6], 1 }
 0x58c   :  { %3125 = vsyncpa [#allocation6 + $0x1], 1 }
 0x58d   :  { %3126 = vsyncpa [#allocation9], 1 }
 0x58e   :  { %3128 = vsyncpa [#allocation9 + $0x1], 1 }
 0x58f   :  { %3129 = vsyncpa [#allocation4], 1 }
 0x590   :  { %3131 = vsyncpa [#allocation4 + $0x1], 1 }

</bundles_post_ra>
